<compile_context>
chip_gen: v7x
topology: tpu7x:2x2x1
jax: 0.10.0
libtpu: 0.0.40
codegen_flags: <defaults>
</compile_context>

<pallas_src>
import jax
import jax.numpy as jnp
from jax.experimental import pallas as pl
from jax.experimental.pallas import tpu as pltpu


# --------------------------- fused kernel ---------------------------

def _make_fused_kernel(B, H, W, Cc, F, Cmid):
    M = B * H * W

    def kernel(xp_ref, wbd_ref, wc_ref, b1_ref, w2_ref, b2_ref, o_ref):
        # ---- fused resolve0+resolve1: 9 im2col taps of the pre-padded concat input, each a
        #      small MXU matmul against the block-diagonal per-tap weight; accumulates the
        #      lane-contiguous concat(g, x) in registers (no scratch, no masked writes). ----
        gx = jnp.zeros((M, 2 * F), jnp.float32)
        for dy in range(3):
            for dx in range(3):
                t = dy * 3 + dx
                tap = xp_ref[:, pl.ds(dy, H), pl.ds(dx, W), :]       # (B, H, W, Cc), full window
                gx = gx + jnp.dot(tap.reshape(M, Cc), wbd_ref[t],
                                  preferred_element_type=jnp.float32)

        # ---- AttBlock2: 1x1 conv (BN folded) over concat(g, x) -> ReLU -> 1-ch conv -> sigmoid ----
        h = jnp.maximum(
            jnp.dot(gx, wc_ref[...], preferred_element_type=jnp.float32) + b1_ref[...], 0.0)
        logit = jnp.dot(h, w2_ref[...], preferred_element_type=jnp.float32) + b2_ref[0, 0]
        att = jax.nn.sigmoid(logit)                                  # (M, 1)

        g = gx[:, :F]
        x = gx[:, F:]
        # out = g*att + x*(1-att) == x + att*(g - x)
        o_ref[...] = (x + att * (g - x)).astype(o_ref.dtype)

    return kernel


def _num_grid_steps(n_batch):
    """One big step per TensorCore: 2 parallel steps on v7x (2 TCs/chip); v5e/v6e and any
    unrecognised device (or jax.devices() failure) fall back to a SINGLE whole-batch step."""
    try:
        kind = jax.devices()[0].device_kind.lower()
    except Exception:
        return 1
    cores = 2 if ("v7" in kind or "7x" in kind) else 1
    steps = max(1, min(cores, n_batch))
    while n_batch % steps != 0:
        steps -= 1
    return steps


def multi_scale_att_forward(x0, x1, params, scale_factors):
    assert scale_factors == [1, 1], "bilinear upsample path not exercised for this config"
    N, H, W, C0 = x0.shape
    C1 = x1.shape[-1]
    Cc = C0 + C1
    F = params["wc"].shape[0] // 2
    Cmid = params["wc"].shape[-1]
    HW = H * W

    # Channel-concat + 1-pixel zero pad once in XLA (~few KB, one-time): inside the kernel
    # every im2col tap is then an unmasked full window — no scratch zero-fill, no halo masks.
    xpad = jnp.pad(jnp.concatenate([x0, x1], axis=-1),
                   ((0, 0), (1, 1), (1, 1), (0, 0)))

    steps = _num_grid_steps(N)
    B = N // steps
    kernel = _make_fused_kernel(B, H, W, Cc, F, Cmid)

    out2d = pl.pallas_call(
        kernel,
        out_shape=jax.ShapeDtypeStruct((N * HW, F), jnp.float32),
        grid=(steps,),
        in_specs=[
            pl.BlockSpec((B, H + 2, W + 2, Cc), lambda n: (n, 0, 0, 0)),   # padded concat input
            pl.BlockSpec((9, Cc, 2 * F), lambda n: (0, 0, 0)),             # block-diag tap weights
            pl.BlockSpec((2 * F, Cmid), lambda n: (0, 0)),                 # wc (BN folded)
            pl.BlockSpec((1, Cmid), lambda n: (0, 0)),                     # b1
            pl.BlockSpec((Cmid, 1), lambda n: (0, 0)),                     # w2
            pl.BlockSpec(memory_space=pltpu.MemorySpace.SMEM),             # b2 scalar
        ],
        out_specs=pl.BlockSpec((B * HW, F), lambda n: (n, 0)),
        compiler_params=pltpu.CompilerParams(dimension_semantics=("parallel",)),
    )(xpad, params["w_bd"], params["wc"], params["b1"], params["w2"], params["b2"])

    return out2d.reshape(N, H, W, F)                                 # free, layout-preserving


# --------------------------- parameters ---------------------------

def init_params(key, c0, c1, out_feats):
    ks = jax.random.split(key, 6)
    cmid = max(out_feats // 4, 32)                      # AttBlock2(out_feats, r=4)
    cc = c0 + c1
    w0 = 0.1 * jax.random.normal(ks[0], (3, 3, c0, out_feats), jnp.float32)   # HWIO
    w1 = 0.1 * jax.random.normal(ks[1], (3, 3, c1, out_feats), jnp.float32)
    wc = 0.1 * jax.random.normal(ks[2], (2 * out_feats, cmid), jnp.float32)   # concat(g,x) order
    b1 = 0.1 * jax.random.normal(ks[3], (cmid,), jnp.float32)
    w2 = 0.1 * jax.random.normal(ks[4], (cmid,), jnp.float32)
    b2 = 0.1 * jax.random.normal(ks[5], (1,), jnp.float32)

    # Inference-mode BatchNorm2d(cmid) with default stats (mean=0, var=1, gamma=1, beta=0),
    # folded into the 1x1 conv.
    eps = 1e-5
    scale = 1.0 / jnp.sqrt(jnp.ones((cmid,), jnp.float32) + eps)
    wc_f = wc * scale[None, :]
    b1_f = b1 * scale

    # Block-diagonal per-tap weight fusing resolve0 and resolve1:
    #   tap t, input channels [0:c0]  -> output cols [0:F]   (resolve0 -> g)
    #   tap t, input channels [c0:cc] -> output cols [F:2F]  (resolve1 -> x)
    w_bd = jnp.zeros((9, cc, 2 * out_feats), jnp.float32)
    w_bd = w_bd.at[:, :c0, :out_feats].set(w0.reshape(9, c0, out_feats))
    w_bd = w_bd.at[:, c0:, out_feats:].set(w1.reshape(9, c1, out_feats))

    return {
        "w0_hwio": w0, "w1_hwio": w1,                   # for the pure-JAX reference
        "w_bd": w_bd,                                   # (9, C0+C1, 2F)
        "wc": wc_f,                                     # (2F, Cmid), BN folded
        "b1": b1_f.reshape(1, cmid),
        "w2": w2.reshape(cmid, 1),
        "b2": b2.reshape(1, 1),
    }


# --------------------------- pure-JAX reference ---------------------------

def reference_forward(x0, x1, p):
    dn = ("NHWC", "HWIO", "NHWC")
    out0 = jax.lax.conv_general_dilated(x0, p["w0_hwio"], (1, 1), "SAME",
                                        dimension_numbers=dn,
                                        precision=jax.lax.Precision.HIGHEST)
    out1 = jax.lax.conv_general_dilated(x1, p["w1_hwio"], (1, 1), "SAME",
                                        dimension_numbers=dn,
                                        precision=jax.lax.Precision.HIGHEST)
    m = jnp.concatenate([out0, out1], axis=-1)
    h = jnp.einsum("nhwc,cm->nhwm", m, p["wc"],
                   precision=jax.lax.Precision.HIGHEST) + p["b1"]
    h = jnp.maximum(h, 0.0)
    logit = jnp.einsum("nhwm,mo->nhwo", h, p["w2"],
                       precision=jax.lax.Precision.HIGHEST) + p["b2"][0, 0]
    att = jax.nn.sigmoid(logit)
    return out0 * att + out1 * (1.0 - att)


# --------------------------- main ---------------------------

if __name__ == "__main__":
    N, H, W = 2, 8, 8
    C0, C1 = 4, 6
    out_feats = 32

    # mirror MultiScaleAtt.__init__: shapes = [(channels, stride), ...]
    shapes = [(C0, 8), (C1, 8)]
    _, min_scale = min(shapes, key=lambda s: s[1])
    scale_factors = [s[1] // min_scale for s in shapes]

    key = jax.random.PRNGKey(0)
    kx0, kx1, kp = jax.random.split(key, 3)
    x0 = jax.random.normal(kx0, (N, H, W, C0), jnp.float32)   # xs[0], NHWC
    x1 = jax.random.normal(kx1, (N, H, W, C1), jnp.float32)   # xs[1], NHWC
    params = init_params(kp, C0, C1, out_feats)

    fwd = jax.jit(lambda a, b, p: multi_scale_att_forward(a, b, p, scale_factors))
    out = jax.block_until_ready(fwd(x0, x1, params))

    ref = jax.block_until_ready(reference_forward(x0, x1, params))
    assert out.shape == (N, H, W, out_feats)
    assert bool(jnp.allclose(out, ref, atol=1e-2, rtol=1e-2)), "mismatch vs reference"

    print("KERNEL_OK")
</pallas_src>

<mosaic_0001>
module attributes {stable_mosaic.version = 11 : i64} {
  func.func @kernel(%arg0: i32, %arg1: memref<2x10x10x10xf32, #tpu.memory_space<vmem>>, %arg2: memref<9x10x64xf32, #tpu.memory_space<vmem>>, %arg3: memref<64x32xf32, #tpu.memory_space<vmem>>, %arg4: memref<1x32xf32, #tpu.memory_space<vmem>>, %arg5: memref<32x1xf32, #tpu.memory_space<vmem>>, %arg6: memref<1x1xf32, #tpu.memory_space<smem>>, %arg7: memref<128x32xf32, #tpu.memory_space<vmem>>) attributes {dimension_semantics = [#tpu.dimension_semantics<parallel>], iteration_bounds = array<i64: 1>, scalar_prefetch = 0 : i64, scratch_operands = 0 : i64, tpu.core_type = #tpu.core_type<tc>, window_params = [{transform_indices = @transform_0, window_bounds = array<i64: 2, 10, 10, 10>}, {pipeline_mode = #tpu.pipeline_mode<synchronous>, transform_indices = @transform_1, window_bounds = array<i64: 9, 10, 64>}, {pipeline_mode = #tpu.pipeline_mode<synchronous>, transform_indices = @transform_2, window_bounds = array<i64: 64, 32>}, {pipeline_mode = #tpu.pipeline_mode<synchronous>, transform_indices = @transform_3, window_bounds = array<i64: 1, 32>}, {pipeline_mode = #tpu.pipeline_mode<synchronous>, transform_indices = @transform_4, window_bounds = array<i64: 32, 1>}, {transform_indices = @transform_5, window_bounds = array<i64: 1, 1>}, {transform_indices = @transform_6, window_bounds = array<i64: 128, 32>}]} {
    %cst = arith.constant 0.000000e+00 : f32
    %0 = vector.broadcast %cst : f32 to vector<128x64xf32>
    %c0 = arith.constant 0 : index
    %c0_0 = arith.constant 0 : index
    %c0_1 = arith.constant 0 : index
    %c0_2 = arith.constant 0 : index
    %1 = vector.load %arg1[%c0, %c0_0, %c0_1, %c0_2] : memref<2x10x10x10xf32, #tpu.memory_space<vmem>>, vector<2x8x8x10xf32>
    %2 = vector.shape_cast %1 : vector<2x8x8x10xf32> to vector<128x10xf32>
    %c0_3 = arith.constant 0 : index
    %c0_4 = arith.constant 0 : index
    %c0_5 = arith.constant 0 : index
    %3 = vector.load %arg2[%c0_3, %c0_4, %c0_5] : memref<9x10x64xf32, #tpu.memory_space<vmem>>, vector<1x10x64xf32>
    %4 = vector.shape_cast %3 : vector<1x10x64xf32> to vector<10x64xf32>
    %cst_6 = arith.constant dense<0.000000e+00> : vector<128x64xf32>
    %5 = tpu.matmul %2, %4, %cst_6 {dimension_numbers = #tpu.dot_dimension_numbers<[1], [0], [0], [1], [0, 0, 1, 1], [], []>} : vector<128x10xf32>, vector<10x64xf32>, vector<128x64xf32> -> vector<128x64xf32>
    %6 = arith.addf %0, %5 : vector<128x64xf32>
    %c0_7 = arith.constant 0 : index
    %c0_8 = arith.constant 0 : index
    %c1 = arith.constant 1 : index
    %c0_9 = arith.constant 0 : index
    %7 = vector.load %arg1[%c0_7, %c0_8, %c1, %c0_9] : memref<2x10x10x10xf32, #tpu.memory_space<vmem>>, vector<2x8x8x10xf32>
    %8 = vector.shape_cast %7 : vector<2x8x8x10xf32> to vector<128x10xf32>
    %c1_10 = arith.constant 1 : index
    %c0_11 = arith.constant 0 : index
    %c0_12 = arith.constant 0 : index
    %9 = vector.load %arg2[%c1_10, %c0_11, %c0_12] : memref<9x10x64xf32, #tpu.memory_space<vmem>>, vector<1x10x64xf32>
    %10 = vector.shape_cast %9 : vector<1x10x64xf32> to vector<10x64xf32>
    %cst_13 = arith.constant dense<0.000000e+00> : vector<128x64xf32>
    %11 = tpu.matmul %8, %10, %cst_13 {dimension_numbers = #tpu.dot_dimension_numbers<[1], [0], [0], [1], [0, 0, 1, 1], [], []>} : vector<128x10xf32>, vector<10x64xf32>, vector<128x64xf32> -> vector<128x64xf32>
    %12 = arith.addf %6, %11 : vector<128x64xf32>
    %c0_14 = arith.constant 0 : index
    %c0_15 = arith.constant 0 : index
    %c2 = arith.constant 2 : index
    %c0_16 = arith.constant 0 : index
    %13 = vector.load %arg1[%c0_14, %c0_15, %c2, %c0_16] : memref<2x10x10x10xf32, #tpu.memory_space<vmem>>, vector<2x8x8x10xf32>
    %14 = vector.shape_cast %13 : vector<2x8x8x10xf32> to vector<128x10xf32>
    %c2_17 = arith.constant 2 : index
    %c0_18 = arith.constant 0 : index
    %c0_19 = arith.constant 0 : index
    %15 = vector.load %arg2[%c2_17, %c0_18, %c0_19] : memref<9x10x64xf32, #tpu.memory_space<vmem>>, vector<1x10x64xf32>
    %16 = vector.shape_cast %15 : vector<1x10x64xf32> to vector<10x64xf32>
    %cst_20 = arith.constant dense<0.000000e+00> : vector<128x64xf32>
    %17 = tpu.matmul %14, %16, %cst_20 {dimension_numbers = #tpu.dot_dimension_numbers<[1], [0], [0], [1], [0, 0, 1, 1], [], []>} : vector<128x10xf32>, vector<10x64xf32>, vector<128x64xf32> -> vector<128x64xf32>
    %18 = arith.addf %12, %17 : vector<128x64xf32>
    %c0_21 = arith.constant 0 : index
    %c1_22 = arith.constant 1 : index
    %c0_23 = arith.constant 0 : index
    %c0_24 = arith.constant 0 : index
    %19 = vector.load %arg1[%c0_21, %c1_22, %c0_23, %c0_24] : memref<2x10x10x10xf32, #tpu.memory_space<vmem>>, vector<2x8x8x10xf32>
    %20 = vector.shape_cast %19 : vector<2x8x8x10xf32> to vector<128x10xf32>
    %c3 = arith.constant 3 : index
    %c0_25 = arith.constant 0 : index
    %c0_26 = arith.constant 0 : index
    %21 = vector.load %arg2[%c3, %c0_25, %c0_26] : memref<9x10x64xf32, #tpu.memory_space<vmem>>, vector<1x10x64xf32>
    %22 = vector.shape_cast %21 : vector<1x10x64xf32> to vector<10x64xf32>
    %cst_27 = arith.constant dense<0.000000e+00> : vector<128x64xf32>
    %23 = tpu.matmul %20, %22, %cst_27 {dimension_numbers = #tpu.dot_dimension_numbers<[1], [0], [0], [1], [0, 0, 1, 1], [], []>} : vector<128x10xf32>, vector<10x64xf32>, vector<128x64xf32> -> vector<128x64xf32>
    %24 = arith.addf %18, %23 : vector<128x64xf32>
    %c0_28 = arith.constant 0 : index
    %c1_29 = arith.constant 1 : index
    %c1_30 = arith.constant 1 : index
    %c0_31 = arith.constant 0 : index
    %25 = vector.load %arg1[%c0_28, %c1_29, %c1_30, %c0_31] : memref<2x10x10x10xf32, #tpu.memory_space<vmem>>, vector<2x8x8x10xf32>
    %26 = vector.shape_cast %25 : vector<2x8x8x10xf32> to vector<128x10xf32>
    %c4 = arith.constant 4 : index
    %c0_32 = arith.constant 0 : index
    %c0_33 = arith.constant 0 : index
    %27 = vector.load %arg2[%c4, %c0_32, %c0_33] : memref<9x10x64xf32, #tpu.memory_space<vmem>>, vector<1x10x64xf32>
    %28 = vector.shape_cast %27 : vector<1x10x64xf32> to vector<10x64xf32>
    %cst_34 = arith.constant dense<0.000000e+00> : vector<128x64xf32>
    %29 = tpu.matmul %26, %28, %cst_34 {dimension_numbers = #tpu.dot_dimension_numbers<[1], [0], [0], [1], [0, 0, 1, 1], [], []>} : vector<128x10xf32>, vector<10x64xf32>, vector<128x64xf32> -> vector<128x64xf32>
    %30 = arith.addf %24, %29 : vector<128x64xf32>
    %c0_35 = arith.constant 0 : index
    %c1_36 = arith.constant 1 : index
    %c2_37 = arith.constant 2 : index
    %c0_38 = arith.constant 0 : index
    %31 = vector.load %arg1[%c0_35, %c1_36, %c2_37, %c0_38] : memref<2x10x10x10xf32, #tpu.memory_space<vmem>>, vector<2x8x8x10xf32>
    %32 = vector.shape_cast %31 : vector<2x8x8x10xf32> to vector<128x10xf32>
    %c5 = arith.constant 5 : index
    %c0_39 = arith.constant 0 : index
    %c0_40 = arith.constant 0 : index
    %33 = vector.load %arg2[%c5, %c0_39, %c0_40] : memref<9x10x64xf32, #tpu.memory_space<vmem>>, vector<1x10x64xf32>
    %34 = vector.shape_cast %33 : vector<1x10x64xf32> to vector<10x64xf32>
    %cst_41 = arith.constant dense<0.000000e+00> : vector<128x64xf32>
    %35 = tpu.matmul %32, %34, %cst_41 {dimension_numbers = #tpu.dot_dimension_numbers<[1], [0], [0], [1], [0, 0, 1, 1], [], []>} : vector<128x10xf32>, vector<10x64xf32>, vector<128x64xf32> -> vector<128x64xf32>
    %36 = arith.addf %30, %35 : vector<128x64xf32>
    %c0_42 = arith.constant 0 : index
    %c2_43 = arith.constant 2 : index
    %c0_44 = arith.constant 0 : index
    %c0_45 = arith.constant 0 : index
    %37 = vector.load %arg1[%c0_42, %c2_43, %c0_44, %c0_45] : memref<2x10x10x10xf32, #tpu.memory_space<vmem>>, vector<2x8x8x10xf32>
    %38 = vector.shape_cast %37 : vector<2x8x8x10xf32> to vector<128x10xf32>
    %c6 = arith.constant 6 : index
    %c0_46 = arith.constant 0 : index
    %c0_47 = arith.constant 0 : index
    %39 = vector.load %arg2[%c6, %c0_46, %c0_47] : memref<9x10x64xf32, #tpu.memory_space<vmem>>, vector<1x10x64xf32>
    %40 = vector.shape_cast %39 : vector<1x10x64xf32> to vector<10x64xf32>
    %cst_48 = arith.constant dense<0.000000e+00> : vector<128x64xf32>
    %41 = tpu.matmul %38, %40, %cst_48 {dimension_numbers = #tpu.dot_dimension_numbers<[1], [0], [0], [1], [0, 0, 1, 1], [], []>} : vector<128x10xf32>, vector<10x64xf32>, vector<128x64xf32> -> vector<128x64xf32>
    %42 = arith.addf %36, %41 : vector<128x64xf32>
    %c0_49 = arith.constant 0 : index
    %c2_50 = arith.constant 2 : index
    %c1_51 = arith.constant 1 : index
    %c0_52 = arith.constant 0 : index
    %43 = vector.load %arg1[%c0_49, %c2_50, %c1_51, %c0_52] : memref<2x10x10x10xf32, #tpu.memory_space<vmem>>, vector<2x8x8x10xf32>
    %44 = vector.shape_cast %43 : vector<2x8x8x10xf32> to vector<128x10xf32>
    %c7 = arith.constant 7 : index
    %c0_53 = arith.constant 0 : index
    %c0_54 = arith.constant 0 : index
    %45 = vector.load %arg2[%c7, %c0_53, %c0_54] : memref<9x10x64xf32, #tpu.memory_space<vmem>>, vector<1x10x64xf32>
    %46 = vector.shape_cast %45 : vector<1x10x64xf32> to vector<10x64xf32>
    %cst_55 = arith.constant dense<0.000000e+00> : vector<128x64xf32>
    %47 = tpu.matmul %44, %46, %cst_55 {dimension_numbers = #tpu.dot_dimension_numbers<[1], [0], [0], [1], [0, 0, 1, 1], [], []>} : vector<128x10xf32>, vector<10x64xf32>, vector<128x64xf32> -> vector<128x64xf32>
    %48 = arith.addf %42, %47 : vector<128x64xf32>
    %c0_56 = arith.constant 0 : index
    %c2_57 = arith.constant 2 : index
    %c2_58 = arith.constant 2 : index
    %c0_59 = arith.constant 0 : index
    %49 = vector.load %arg1[%c0_56, %c2_57, %c2_58, %c0_59] : memref<2x10x10x10xf32, #tpu.memory_space<vmem>>, vector<2x8x8x10xf32>
    %50 = vector.shape_cast %49 : vector<2x8x8x10xf32> to vector<128x10xf32>
    %c8 = arith.constant 8 : index
    %c0_60 = arith.constant 0 : index
    %c0_61 = arith.constant 0 : index
    %51 = vector.load %arg2[%c8, %c0_60, %c0_61] : memref<9x10x64xf32, #tpu.memory_space<vmem>>, vector<1x10x64xf32>
    %52 = vector.shape_cast %51 : vector<1x10x64xf32> to vector<10x64xf32>
    %cst_62 = arith.constant dense<0.000000e+00> : vector<128x64xf32>
    %53 = tpu.matmul %50, %52, %cst_62 {dimension_numbers = #tpu.dot_dimension_numbers<[1], [0], [0], [1], [0, 0, 1, 1], [], []>} : vector<128x10xf32>, vector<10x64xf32>, vector<128x64xf32> -> vector<128x64xf32>
    %54 = arith.addf %48, %53 : vector<128x64xf32>
    %c0_63 = arith.constant 0 : index
    %c0_64 = arith.constant 0 : index
    %55 = vector.load %arg3[%c0_63, %c0_64] : memref<64x32xf32, #tpu.memory_space<vmem>>, vector<64x32xf32>
    %cst_65 = arith.constant dense<0.000000e+00> : vector<128x32xf32>
    %56 = tpu.matmul %54, %55, %cst_65 {dimension_numbers = #tpu.dot_dimension_numbers<[1], [0], [0], [1], [0, 0, 1, 1], [], []>} : vector<128x64xf32>, vector<64x32xf32>, vector<128x32xf32> -> vector<128x32xf32>
    %c0_66 = arith.constant 0 : index
    %c0_67 = arith.constant 0 : index
    %57 = vector.load %arg4[%c0_66, %c0_67] : memref<1x32xf32, #tpu.memory_space<vmem>>, vector<1x32xf32>
    %58 = vector.broadcast %57 : vector<1x32xf32> to vector<128x32xf32>
    %59 = arith.addf %56, %58 : vector<128x32xf32>
    %cst_68 = arith.constant 0.000000e+00 : f32
    %60 = vector.broadcast %cst_68 : f32 to vector<128x32xf32>
    %61 = arith.maximumf %59, %60 : vector<128x32xf32>
    %c0_69 = arith.constant 0 : index
    %c0_70 = arith.constant 0 : index
    %62 = vector.load %arg5[%c0_69, %c0_70] : memref<32x1xf32, #tpu.memory_space<vmem>>, vector<32x1xf32>
    %cst_71 = arith.constant dense<0.000000e+00> : vector<128x1xf32>
    %63 = tpu.matmul %61, %62, %cst_71 {dimension_numbers = #tpu.dot_dimension_numbers<[1], [0], [0], [1], [0, 0, 1, 1], [], []>} : vector<128x32xf32>, vector<32x1xf32>, vector<128x1xf32> -> vector<128x1xf32>
    %c0_72 = arith.constant 0 : index
    %c0_73 = arith.constant 0 : index
    %64 = memref.load %arg6[%c0_72, %c0_73] : memref<1x1xf32, #tpu.memory_space<smem>>
    %65 = vector.broadcast %64 : f32 to vector<128x1xf32>
    %66 = arith.addf %63, %65 : vector<128x1xf32>
    %67 = arith.negf %66 : vector<128x1xf32>
    %68 = math.exp %67 : vector<128x1xf32>
    %cst_74 = arith.constant 1.000000e+00 : f32
    %69 = vector.broadcast %cst_74 : f32 to vector<128x1xf32>
    %70 = arith.addf %69, %68 : vector<128x1xf32>
    %71 = arith.divf %69, %70 : vector<128x1xf32>
    %72 = vector.extract_strided_slice %54 {offsets = [0, 0], sizes = [128, 32], strides = [1, 1]} : vector<128x64xf32> to vector<128x32xf32>
    %73 = vector.extract_strided_slice %54 {offsets = [0, 32], sizes = [128, 32], strides = [1, 1]} : vector<128x64xf32> to vector<128x32xf32>
    %74 = arith.subf %72, %73 : vector<128x32xf32>
    %75 = vector.broadcast %71 : vector<128x1xf32> to vector<128x32xf32>
    %76 = arith.mulf %75, %74 : vector<128x32xf32>
    %77 = arith.addf %73, %76 : vector<128x32xf32>
    %c0_75 = arith.constant 0 : index
    %c0_76 = arith.constant 0 : index
    %78 = vector.load %arg7[%c0_75, %c0_76] : memref<128x32xf32, #tpu.memory_space<vmem>>, vector<128x32xf32>
    tpu.vector_store %arg7[%c0_75, %c0_76], %77 {strides = array<i32>} : memref<128x32xf32, #tpu.memory_space<vmem>>, vector<128x32xf32>,
    return
  }
  func.func @transform_0(%arg0: i32) -> (i32, i32, i32, i32) {
    %c0_i32 = arith.constant 0 : i32
    %c0_i32_0 = arith.constant 0 : i32
    %c0_i32_1 = arith.constant 0 : i32
    %c0_i32_2 = arith.constant 0 : i32
    return %arg0, %c0_i32, %c0_i32_0, %c0_i32_1 : i32, i32, i32, i32
  }
  func.func @transform_1(%arg0: i32) -> (i32, i32, i32) {
    %c0_i32 = arith.constant 0 : i32
    %c0_i32_0 = arith.constant 0 : i32
    %c0_i32_1 = arith.constant 0 : i32
    %c0_i32_2 = arith.constant 0 : i32
    return %c0_i32, %c0_i32_0, %c0_i32_1 : i32, i32, i32
  }
  func.func @transform_2(%arg0: i32) -> (i32, i32) {
    %c0_i32 = arith.constant 0 : i32
    %c0_i32_0 = arith.constant 0 : i32
    %c0_i32_1 = arith.constant 0 : i32
    return %c0_i32, %c0_i32_0 : i32, i32
  }
  func.func @transform_3(%arg0: i32) -> (i32, i32) {
    %c0_i32 = arith.constant 0 : i32
    %c0_i32_0 = arith.constant 0 : i32
    %c0_i32_1 = arith.constant 0 : i32
    return %c0_i32, %c0_i32_0 : i32, i32
  }
  func.func @transform_4(%arg0: i32) -> (i32, i32) {
    %c0_i32 = arith.constant 0 : i32
    %c0_i32_0 = arith.constant 0 : i32
    %c0_i32_1 = arith.constant 0 : i32
    return %c0_i32, %c0_i32_0 : i32, i32
  }
  func.func @transform_5(%arg0: i32) -> (i32, i32) {
    %c0_i32 = arith.constant 0 : i32
    %c0_i32_0 = arith.constant 0 : i32
    %c0_i32_1 = arith.constant 0 : i32
    return %c0_i32, %c0_i32_0 : i32, i32
  }
  func.func @transform_6(%arg0: i32) -> (i32, i32) {
    %c0_i32 = arith.constant 0 : i32
    %c0_i32_0 = arith.constant 0 : i32
    return %arg0, %c0_i32 : i32, i32
  }
}

</mosaic_0001>

<bundles_post_ra>
// kernel: _lambda_.1
= control target key start
LH: loop header
LB: loop body
LE: loop exit
PB: predicated region body
PF: predicated region fallthrough
CT: control target
= control target key end

     0   :  { %vm111_vm0 = vcmask 1041408   ;;  %vm4081_vm1 = vmmov 1   ;;  %vm62_vm3 = vcmask 80896   ;;  %s5035_s0 = inlined_call_operand.vmem [shape: f32[2,10,10,10], index: 0, kind: input, shape index: {}]   ;;  %s5036_s1 = inlined_call_operand.vmem [shape: f32[9,10,64], index: 1, kind: input, shape index: {}]   ;;  %s5037_s2 = inlined_call_operand.vmem [shape: f32[64,32], index: 2, kind: input, shape index: {}]   ;;  %s5038_s3 = inlined_call_operand.vmem [shape: f32[1,32], index: 3, kind: input, shape index: {}]   ;;  %s5039_s4 = inlined_call_operand.vmem [shape: f32[32,1], index: 4, kind: input, shape index: {}]   ;;  %s5040_s5 = inlined_call_operand.<no memory space> [shape: f32[1,1], index: 5, kind: input, shape index: {}]   ;;  %s5041_s6 = inlined_call_operand.hbm [shape: f32[128,32], index: 6, kind: output, shape index: {}]  }
   0x1   :  { %v2932_v0 = vld [vmem:[%s5036_s1 + $0x10] sm:$0xff]  ;;  %v2933_v1 = vld [vmem:[%s5036_s1 + $0x18] sm:$0x3]  ;;  %vm4132_vm2 = vmpackc.low %vm111_vm0, %vm4081_vm1 }
   0x2   :  { %v3003_v2 = vld [vmem:[%s5036_s1 + $0x30] sm:$0xff]  ;;  %v3776_v3 = vpack.c.bf16 %v2933_v1, %v2932_v0  ;;  %v3004_v5 = vld [vmem:[%s5036_s1 + $0x38] sm:$0x3]  ;;  %v43_v6 = vld [vmem:[%s5035_s0 + $0x1] sm:$0xff] }
   0x3   :  { %v4142_v7 = vpack.c.bf16 %v3004_v5, %v3003_v2  ;;  %3456 = vmatprep.mubr.msk.f32.mxu1 %vm62_vm3, %v43_v6  ;;  %v4148_v8 = vld [vmem:[%s5035_s0 + $0x10] sm:$0xff]  ;;  %v3038_v9 = vld [vmem:[%s5036_s1 + $0x40] sm:$0xff]  ;;  %v3039_v10 = vld [vmem:[%s5036_s1 + $0x48] sm:$0x3] }
   0x4   :  { %3778 = vmatprep.subr.msk.bf16.mxu1 %vm4132_vm2, %v3776_v3  ;;  %3540 = vmatprep.mubr.msk.f32.mxu0 %vm62_vm3, %v4148_v8  ;;  %v44_v11 = vld [vmem:[%s5035_s0 + $0x11] sm:$0xff]  ;;  %v3800_v12 = vpack.c.bf16 %v3039_v10, %v3038_v9  ;;  %v4174_v13 = vld [vmem:[%s5035_s0 + $0x20] sm:$0xff]  ;;  %v42_v24 = vld [vmem:[%s5036_s1 + $0x8] sm:$0x3] }
   0x5   :  { %3796 = vmatprep.subr.msk.bf16.mxu0 %vm4132_vm2, %v4142_v7  ;;  %3781 = vmatpush3.bf16.msk.msra.mxu1 %vm4132_vm2, %v3776_v3  ;;  %v4179_v14 = vld [vmem:[%s5035_s0 + $0x21] sm:$0xff]  ;;  %v4186_v15 = vld [vmem:[%s5035_s0 + $0x30] sm:$0xff]  ;;  %v3074_v18 = vld [vmem:[%s5036_s1 + $0x58] sm:$0x3] }
   0x6   :  { %3799 = vmatpush3.bf16.msk.msra.mxu0 %vm4132_vm2, %v4142_v7  ;;  %v4196_v16 = vld [vmem:[%s5035_s0 + $0x31] sm:$0xff]  ;;  %v4211_v19 = vld [vmem:[%s5035_s0 + $0x40] sm:$0xff]  ;;  %v2969_v34 = vld [vmem:[%s5036_s1 + $0x28] sm:$0x3] }
   0x7   :  { %3802 = vmatprep.subr.msk.bf16.mxu0 %vm4132_vm2, %v3800_v12  ;;  %v3073_v17 = vld [vmem:[%s5036_s1 + $0x50] sm:$0xff]  ;;  %v4216_v20 = vld [vmem:[%s5035_s0 + $0x41] sm:$0xff] }
   0x8   :  { %3457 = vmatmul.mubr.msk.f32.vlgmr.msra.gmra.mrb[0].mxu1 %vm62_vm3, %v44_v11  ;;  %v3806_v21 = vpack.c.bf16 %v3074_v18, %v3073_v17  ;;  %v4221_v22 = vld [vmem:[%s5035_s0 + $0x50] sm:$0xff]  ;;  %v41_v23 = vld [vmem:[%s5036_s1] sm:$0xff]  ;;  %v3109_v36 = vld [vmem:[%s5036_s1 + $0x68] sm:$0x3] }
   0x9   :  { %3541 = vmatmul.mubr.msk.f32.vlgmr.msra.gmra.mrb[0].mxu0 %vm62_vm3, %v4174_v13  ;;  %3459 = vmatprep.mubr.msk.f32.mxu1 %vm62_vm3, %v4179_v14  ;;  %v4240_v25 = vld [vmem:[%s5035_s0 + $0x51] sm:$0xff]  ;;  %v3782_v26 = vpack.c.bf16 %v42_v24, %v41_v23  ;;  %v4247_v27 = vld [vmem:[%s5035_s0 + $0x60] sm:$0xff] }
   0xa   :  { %3805 = vmatpush3.bf16.msk.msra.mxu0 %vm4132_vm2, %v3800_v12  ;;  %3543 = vmatprep.mubr.msk.f32.mxu0 %vm62_vm3, %v4186_v15  ;;  %v4252_v28 = vld [vmem:[%s5035_s0 + $0x61] sm:$0xff]  ;;  %v4257_v29 = vld [vmem:[%s5035_s0 + $0x70] sm:$0xff] }
   0xb   :  { %3808 = vmatprep.subr.msk.bf16.mxu0 %vm4132_vm2, %v3806_v21  ;;  %3784 = vmatprep.subr.msk.bf16.mxu1 %vm4132_vm2, %v3782_v26  ;;  %v4270_v30 = vld [vmem:[%s5035_s0 + $0x71] sm:$0xff]  ;;  %v4277_v31 = vld [vmem:[%s5035_s0 + $0x80] sm:$0xff] }
   0xc   :  { %3460 = vmatmul.mubr.msk.f32.gmra.mrb[2].mxu1 %vm62_vm3, %v4196_v16  ;;  %v51_v32 = vld [vmem:[%s5035_s0 + $0xa1] sm:$0xff]  ;;  %v52_v38 = vld [vmem:[%s5035_s0 + $0xb1] sm:$0xff] }
   0xd   :  { %3544 = vmatmul.mubr.msk.f32.gmra.mrb[2].mxu0 %vm62_vm3, %v4211_v19  ;;  %3462 = vmatprep.mubr.msk.f32.mxu1 %vm62_vm3, %v4216_v20  ;;  %v2968_v33 = vld [vmem:[%s5036_s1 + $0x20] sm:$0xff]  ;;  %v4320_v41 = vld [vmem:[%s5035_s0 + $0xd1] sm:$0xff] }
   0xe   :  { %3546 = vmatprep.mubr.msk.f32.mxu0 %vm62_vm3, %v4221_v22  ;;  %3787 = vmatpush3.bf16.msk.msra.mxu1 %vm4132_vm2, %v3782_v26  ;;  %v3108_v35 = vld [vmem:[%s5036_s1 + $0x60] sm:$0xff]  ;;  %v3788_v37 = vpack.c.bf16 %v2969_v34, %v2968_v33 }
   0xf   :  { %v4308_v39 = vld [vmem:[%s5035_s0 + $0xc1] sm:$0xff]  ;;  %v3812_v40 = vpack.c.bf16 %v3109_v36, %v3108_v35 }
  0x10   :  { %3463 = vmatmul.mubr.msk.f32.gmra.mrb[4].mxu1 %vm62_vm3, %v4240_v25  ;;  %3790 = vmatprep.subr.msk.bf16.mxu1 %vm4132_vm2, %v3788_v37  ;;  %v4329_v42 = vld [vmem:[%s5035_s0 + $0xe1] sm:$0xff] }
  0x11   :  { %3547 = vmatmul.mubr.msk.f32.gmra.mrb[4].mxu0 %vm62_vm3, %v4247_v27  ;;  %3465 = vmatprep.mubr.msk.f32.mxu1 %vm62_vm3, %v4252_v28 }
  0x12   :  { %3549 = vmatprep.mubr.msk.f32.mxu0 %vm62_vm3, %v4257_v29 }
  0x14   :  { %3466 = vmatmul.mubr.msk.f32.gmra.mrb[6].mxu1 %vm62_vm3, %v4270_v30 }
  0x15   :  { %3550 = vmatmul.mubr.msk.f32.gmra.mrb[6].mxu0 %vm62_vm3, %v4277_v31  ;;  %3468 = vmatprep.mubr.msk.f32.mxu1 %vm62_vm3, %v51_v32 }
  0x16   :  { %3568 = vmatprep.mubr.msk.f32.mxu0 %vm62_vm3, %v44_v11 }
  0x18   :  { %3469 = vmatmul.mubr.msk.f32.gmra.mrb[8].mxu1 %vm62_vm3, %v52_v38 }
  0x19   :  { %3569 = vmatmul.mubr.msk.f32.vlgmr.msra.gmra.mrb[0].mxu0 %vm62_vm3, %v4179_v14  ;;  %3471 = vmatprep.mubr.msk.f32.mxu1 %vm62_vm3, %v4308_v39 }
  0x1a   :  { %3811 = vmatpush3.bf16.msk.msra.mxu0 %vm4132_vm2, %v3806_v21  ;;  %3571 = vmatprep.mubr.msk.f32.mxu0 %vm62_vm3, %v4196_v16 }
  0x1b   :  { %12 = vsyncpa [#allocation4], 0  ;;  %3814 = vmatprep.subr.msk.bf16.mxu0 %vm4132_vm2, %v3812_v40  ;;  %v4342_v43 = vld [vmem:[%s5035_s0 + $0xf1] sm:$0xff]  ;;  %v4349_v44 = vld [vmem:[%s5035_s0 + $0x101] sm:$0xff]  ;;  %vm2090_vm4 = vcmask 523264   ;;  %vm2306_vm5 = vcmask 261120  }
  0x1c   :  { %3472 = vmatmul.mubr.msk.f32.gmra.mrb[10].mxu1 %vm62_vm3, %v4320_v41  ;;  %v4360_v45 = vld [vmem:[%s5035_s0 + $0x111] sm:$0xff]  ;;  %v4367_v46 = vld [vmem:[%s5035_s0 + $0x81] sm:$0xff]  ;;  %s4085_s8 = smov [#allocation3]  }
  0x1d   :  { %3572 = vmatmul.mubr.msk.f32.gmra.mrb[2].mxu0 %vm62_vm3, %v4216_v20  ;;  %3474 = vmatprep.mubr.msk.f32.mxu1 %vm62_vm3, %v4329_v42  ;;  %v25_v47 = vld [vmem:[%s5035_s0] sm:$0xff]  ;;  %v3057_v50 = vld [vmem:[%s5035_s0 + $0x12] sm:$0xff]  ;;  %v3179_v23 = vld [vmem:[%s5036_s1 + $0x88] sm:$0x3]  ;;  %s2921_s9 = sshll.u32 %s4085_s8, 4  ;;  %s2922_s9 = int_to_ptr.vmem [resolvable:$true] %s2921_s9 }
  0x1e   :  { %3574 = vmatprep.mubr.msk.f32.mxu0 %vm62_vm3, %v4240_v25  ;;  %v4410_v48 = vld [vmem:[%s5035_s0 + $0x121] sm:$0xff]  ;;  %v3143_v51 = vld [vmem:[%s5036_s1 + $0x70] sm:$0xff]  ;;  %v3144_v52 = vld [vmem:[%s5036_s1 + $0x78] sm:$0x3]  ;;  %s4057_s10 = scalar_lea.vmem %s2922_s9, 2048  ;;  %p4062_p1 = scmp.lt.s32.totalorder %s2922_s9, %s2922_s9 }
  0x1f   :  { %v33_v49 = vld [vmem:[%s5035_s0 + $0xa0] sm:$0xff]  ;;  %v4432_v53 = vld [vmem:[%s5035_s0 + $0xb0] sm:$0xff]  ;;  %v3818_v57 = vpack.c.bf16 %v3144_v52, %v3143_v51  ;;  %v2082_v34 = vld [vmem:[%s5037_s2 + $0x38] sm:$0xff]  ;;  %p4058_p0 = scmp.ne.s32.totalorder %s2922_s9, %s4057_s10  ;;  %p4063_p2 = scmp.lt.s32.totalorder %s4057_s10, %s4057_s10 }
  0x20   :  { %3475 = vmatmul.mubr.msk.f32.gmra.mrb[12].mxu1 %vm62_vm3, %v4342_v43  ;;  %v4438_v54 = vld [vmem:[%s5035_s0 + $0x22] sm:$0xff]  ;;  %v4448_v56 = vld [vmem:[%s5035_s0 + $0x32] sm:$0xff] }
  0x21   :  { %3575 = vmatmul.mubr.msk.f32.gmra.mrb[4].mxu0 %vm62_vm3, %v4252_v28  ;;  %3477 = vmatprep.mubr.msk.f32.mxu1 %vm62_vm3, %v4349_v44  ;;  %v4443_v55 = vld [vmem:[%s5035_s0 + $0xc0] sm:$0xff]  ;;  %v4459_v58 = vld [vmem:[%s5035_s0 + $0xd0] sm:$0xff]  ;;  %p4064_p3 = por %p4063_p2, %p4062_p1 }
  0x22   :  { %3577 = vmatprep.mubr.msk.f32.mxu0 %vm62_vm3, %v4270_v30  ;;  %v4468_v59 = vld [vmem:[%s5035_s0 + $0x42] sm:$0xff]  ;;  %v4478_v61 = vld [vmem:[%s5035_s0 + $0x52] sm:$0xff] }
  0x23   :  { %v4473_v60 = vld [vmem:[%s5035_s0 + $0xe0] sm:$0xff]  ;;  %v4491_v62 = vld [vmem:[%s5035_s0 + $0xf0] sm:$0xff]  ;;  %p4065_p4 = pnand %p4064_p3, %p4058_p0 }
  0x24   :  { %3478 = vmatmul.mubr.msk.f32.gmra.mrb[14].mxu1 %vm62_vm3, %v4360_v45  ;;  %v4498_v63 = vld [vmem:[%s5035_s0 + $0x62] sm:$0xff]  ;;  %v4508_v1 = vld [vmem:[%s5035_s0 + $0x72] sm:$0xff] }
  0x25   :  { %3578 = vmatmul.mubr.msk.f32.gmra.mrb[6].mxu0 %vm62_vm3, %v4367_v46  ;;  %3484 = vmatprep.mubr.msk.f32.mxu1 %vm62_vm3, %v25_v47  ;;  %v4503_v0 = vld [vmem:[%s5035_s0 + $0x100] sm:$0xff]  ;;  %v4519_v2 = vld [vmem:[%s5035_s0 + $0x110] sm:$0xff] }
  0x26   :  { %3580 = vmatprep.mubr.msk.f32.mxu0 %vm62_vm3, %v52_v38  ;;  %v4526_v3 = vld [vmem:[%s5035_s0 + $0x82] sm:$0xff]  ;;  %v3065_v6 = vld [vmem:[%s5035_s0 + $0xb2] sm:$0xff] }
  0x27   :  { %v456_v5 = vld [vmem:[%s5035_s0 + $0x2] sm:$0xff]  ;;  %v4548_v9 = vld [vmem:[%s5035_s0 + $0xd2] sm:$0xff] }
  0x28   :  { %3485 = vmatmul.mubr.msk.f32.vlgmr.msra.gmra.mrb[0].mxu1 %vm62_vm3, %v4148_v8  ;;  %v4543_v8 = vld [vmem:[%s5035_s0 + $0xc2] sm:$0xff]  ;;  %v4568_v11 = vld [vmem:[%s5035_s0 + $0xf2] sm:$0xff] }
  0x29   :  { %3581 = vmatmul.mubr.msk.f32.gmra.mrb[8].mxu0 %vm62_vm3, %v4308_v39  ;;  %3487 = vmatprep.mubr.msk.f32.mxu1 %vm62_vm3, %v4174_v13  ;;  %v4560_v10 = vld [vmem:[%s5035_s0 + $0xe2] sm:$0xff]  ;;  %v4586_v12 = vld [vmem:[%s5035_s0 + $0x112] sm:$0xff] }
  0x2a   :  { %3583 = vmatprep.mubr.msk.f32.mxu0 %vm62_vm3, %v4320_v41  ;;  %3793 = vmatpush3.bf16.msk.msra.mxu1 %vm4132_vm2, %v3788_v37  ;;  %v4599_v17 = vld [vmem:[%s5035_s0 + $0x122] sm:$0xff]  ;;  %v3134_v4 = vld [vmem:[%s5035_s0 + $0x91] sm:$0xff] }
  0x2b   :  { %3854 = vmatprep.subr.msk.bf16.mxu1 %vm4132_vm2, %v4142_v7  ;;  %v464_v18 = vld [vmem:[%s5035_s0 + $0xa2] sm:$0xff]  ;;  %v2077_v26 = vld [vmem:[%s5037_s2 + $0x10] sm:$0xff] }
  0x2c   :  { %3488 = vmatmul.mubr.msk.f32.gmra.mrb[2].mxu1 %vm62_vm3, %v4186_v15  ;;  %v3178_v21 = vld [vmem:[%s5036_s1 + $0x80] sm:$0xff]  ;;  %v2081_v33 = vld [vmem:[%s5037_s2 + $0x30] sm:$0xff] }
  0x2d   :  { %3584 = vmatmul.mubr.msk.f32.gmra.mrb[10].mxu0 %vm62_vm3, %v4329_v42  ;;  %3490 = vmatprep.mubr.msk.f32.mxu1 %vm62_vm3, %v4211_v19  ;;  %v3824_v24 = vpack.c.bf16 %v3179_v23, %v3178_v21  ;;  %v3842_v35 = vpack.c.bf16 %v2082_v34, %v2081_v33 }
  0x2e   :  { %3586 = vmatprep.mubr.msk.f32.mxu0 %vm62_vm3, %v4342_v43 }
  0x30   :  { %3491 = vmatmul.mubr.msk.f32.gmra.mrb[4].mxu1 %vm62_vm3, %v4221_v22 }
  0x31   :  { %3587 = vmatmul.mubr.msk.f32.gmra.mrb[12].mxu0 %vm62_vm3, %v4349_v44  ;;  %3493 = vmatprep.mubr.msk.f32.mxu1 %vm62_vm3, %v4247_v27 }
  0x32   :  { %3589 = vmatprep.mubr.msk.f32.mxu0 %vm62_vm3, %v4360_v45 }
  0x34   :  { %3494 = vmatmul.mubr.msk.f32.gmra.mrb[6].mxu1 %vm62_vm3, %v4257_v29 }
  0x35   :  { %3590 = vmatmul.mubr.msk.f32.gmra.mrb[14].mxu0 %vm62_vm3, %v4410_v48  ;;  %3496 = vmatprep.mubr.msk.f32.mxu1 %vm62_vm3, %v33_v49 }
  0x36   :  { %3596 = vmatprep.mubr.msk.f32.mxu0 %vm62_vm3, %v3057_v50 }
  0x38   :  { %3497 = vmatmul.mubr.msk.f32.gmra.mrb[8].mxu1 %vm62_vm3, %v4432_v53 }
  0x39   :  { %3597 = vmatmul.mubr.msk.f32.vlgmr.msra.gmra.mrb[0].mxu0 %vm62_vm3, %v4438_v54  ;;  %3499 = vmatprep.mubr.msk.f32.mxu1 %vm62_vm3, %v4443_v55 }
  0x3a   :  { %3817 = vmatpush3.bf16.msk.msra.mxu0 %vm4132_vm2, %v3812_v40  ;;  %3599 = vmatprep.mubr.msk.f32.mxu0 %vm62_vm3, %v4448_v56 }
  0x3b   :  { %3820 = vmatprep.subr.msk.bf16.mxu0 %vm4132_vm2, %v3818_v57 }
  0x3c   :  { %3500 = vmatmul.mubr.msk.f32.gmra.mrb[10].mxu1 %vm62_vm3, %v4459_v58 }
  0x3d   :  { %3600 = vmatmul.mubr.msk.f32.gmra.mrb[2].mxu0 %vm62_vm3, %v4468_v59  ;;  %3502 = vmatprep.mubr.msk.f32.mxu1 %vm62_vm3, %v4473_v60 }
  0x3e   :  { %3602 = vmatprep.mubr.msk.f32.mxu0 %vm62_vm3, %v4478_v61 }
  0x40   :  { %3503 = vmatmul.mubr.msk.f32.gmra.mrb[12].mxu1 %vm62_vm3, %v4491_v62 }
  0x41   :  { %3603 = vmatmul.mubr.msk.f32.gmra.mrb[4].mxu0 %vm62_vm3, %v4498_v63  ;;  %3505 = vmatprep.mubr.msk.f32.mxu1 %vm62_vm3, %v4503_v0 }
  0x42   :  { %3605 = vmatprep.mubr.msk.f32.mxu0 %vm62_vm3, %v4508_v1 }
  0x44   :  { %3506 = vmatmul.mubr.msk.f32.gmra.mrb[14].mxu1 %vm62_vm3, %v4519_v2 }
  0x45   :  { %3606 = vmatmul.mubr.msk.f32.gmra.mrb[6].mxu0 %vm62_vm3, %v4526_v3  ;;  %3512 = vmatprep.mubr.msk.f32.mxu1 %vm62_vm3, %v456_v5  ;;  %v2300_v5 = vld [vmem:[%s5039_s4] sm:$0xff] }
  0x46   :  { %3608 = vmatprep.mubr.msk.f32.mxu0 %vm62_vm3, %v3065_v6 }
  0x48   :  { %3513 = vmatmul.mubr.msk.f32.vlgmr.msra.gmra.mrb[0].mxu1 %vm62_vm3, %v3057_v50 }
  0x49   :  { %3609 = vmatmul.mubr.msk.f32.gmra.mrb[8].mxu0 %vm62_vm3, %v4543_v8  ;;  %3515 = vmatprep.mubr.msk.f32.mxu1 %vm62_vm3, %v4438_v54 }
  0x4a   :  { %3611 = vmatprep.mubr.msk.f32.mxu0 %vm62_vm3, %v4548_v9  ;;  %3855 = vmatpush3.bf16.msk.msra.mxu1 %vm4132_vm2, %v4142_v7  ;;  %v4581_v7 = vld [vmem:[%s5035_s0 + $0x102] sm:$0xff] }
  0x4c   :  { %3516 = vmatmul.mubr.msk.f32.gmra.mrb[2].mxu1 %vm62_vm3, %v4448_v56 }
  0x4d   :  { %3612 = vmatmul.mubr.msk.f32.gmra.mrb[10].mxu0 %vm62_vm3, %v4560_v10  ;;  %3518 = vmatprep.mubr.msk.f32.mxu1 %vm62_vm3, %v4468_v59 }
  0x4e   :  { %3614 = vmatprep.mubr.msk.f32.mxu0 %vm62_vm3, %v4568_v11 }
  0x50   :  { %3519 = vmatmul.mubr.msk.f32.gmra.mrb[4].mxu1 %vm62_vm3, %v4478_v61 }
  0x51   :  { %3615 = vmatmul.mubr.msk.f32.gmra.mrb[12].mxu0 %vm62_vm3, %v4581_v7  ;;  %3521 = vmatprep.mubr.msk.f32.mxu1 %vm62_vm3, %v4498_v63 }
  0x52   :  { %3617 = vmatprep.mubr.msk.f32.mxu0 %vm62_vm3, %v4586_v12 }
  0x54   :  { %3522 = vmatmul.mubr.msk.f32.gmra.mrb[6].mxu1 %vm62_vm3, %v4508_v1 }
  0x55   :  { %3618 = vmatmul.mubr.msk.f32.gmra.mrb[14].mxu0 %vm62_vm3, %v4599_v17  ;;  %3524 = vmatprep.mubr.msk.f32.mxu1 %vm62_vm3, %v464_v18 }
  0x56   :  { %3624 = vmatprep.mubr.msk.f32.mxu0 %vm62_vm3, %v4174_v13  ;;  %v3099_v13 = vld [vmem:[%s5035_s0 + $0x90] sm:$0xff] }
  0x58   :  { %3525 = vmatmul.mubr.msk.f32.gmra.mrb[8].mxu1 %vm62_vm3, %v3065_v6  ;;  %v2301_v6 = vld [vmem:[%s5039_s4 + $0x8] sm:$0xff] }
  0x59   :  { %3625 = vmatmul.mubr.msk.f32.vlgmr.msra.gmra.mrb[0].mxu0 %vm62_vm3, %v4186_v15  ;;  %3527 = vmatprep.mubr.msk.f32.mxu1 %vm62_vm3, %v4543_v8  ;;  %v3106_v15 = vld [vmem:[%s5035_s0 + $0x120] sm:$0xff] }
  0x5a   :  { %3823 = vmatpush3.bf16.msk.msra.mxu0 %vm4132_vm2, %v3818_v57  ;;  %3627 = vmatprep.mubr.msk.f32.mxu0 %vm62_vm3, %v4211_v19  ;;  %v3107_v19 = vld [vmem:[%s5035_s0 + $0x130] sm:$0xff] }
  0x5b   :  { %3826 = vmatprep.subr.msk.bf16.mxu0 %vm4132_vm2, %v3824_v24 }
  0x5c   :  { %3528 = vmatmul.mubr.msk.f32.gmra.mrb[10].mxu1 %vm62_vm3, %v4548_v9 }
  0x5d   :  { %3628 = vmatmul.mubr.msk.f32.gmra.mrb[2].mxu0 %vm62_vm3, %v4221_v22  ;;  %3530 = vmatprep.mubr.msk.f32.mxu1 %vm62_vm3, %v4560_v10  ;;  %v2075_v22 = vld [vmem:[%s5037_s2] sm:$0xff] }
  0x5e   :  { %3630 = vmatprep.mubr.msk.f32.mxu0 %vm62_vm3, %v4247_v27 }
  0x60   :  { %3531 = vmatmul.mubr.msk.f32.gmra.mrb[12].mxu1 %vm62_vm3, %v4568_v11 }
  0x61   :  { %3631 = vmatmul.mubr.msk.f32.gmra.mrb[4].mxu0 %vm62_vm3, %v4257_v29  ;;  %3533 = vmatprep.mubr.msk.f32.mxu1 %vm62_vm3, %v4581_v7 }
  0x62   :  { %3633 = vmatprep.mubr.msk.f32.mxu0 %vm62_vm3, %v4277_v31  ;;  %v2080_v31 = vld [vmem:[%s5037_s2 + $0x28] sm:$0xff] }
  0x64   :  { %3534 = vmatmul.mubr.msk.f32.gmra.mrb[14].mxu1 %vm62_vm3, %v4586_v12 }
  0x65   :  { %3634 = vmatmul.mubr.msk.f32.gmra.mrb[6].mxu0 %vm62_vm3, %v3099_v13  ;;  %3552 = vmatprep.mubr.msk.f32.mxu1 %vm62_vm3, %v4432_v53 }
  0x66   :  { %3636 = vmatprep.mubr.msk.f32.mxu0 %vm62_vm3, %v4443_v55 }
  0x68   :  { %3553 = vmatmul.mubr.msk.f32.vlgmr.msra.gmra.mrb[8].mxu1 %vm62_vm3, %v4443_v55 }
  0x69   :  { %3637 = vmatmul.mubr.msk.f32.gmra.mrb[8].mxu0 %vm62_vm3, %v4459_v58  ;;  %3555 = vmatprep.mubr.msk.f32.mxu1 %vm62_vm3, %v4459_v58 }
  0x6a   :  { %3639 = vmatprep.mubr.msk.f32.mxu0 %vm62_vm3, %v4473_v60 }
  0x6c   :  { %3556 = vmatmul.mubr.msk.f32.gmra.mrb[10].mxu1 %vm62_vm3, %v4473_v60 }
  0x6d   :  { %3640 = vmatmul.mubr.msk.f32.gmra.mrb[10].mxu0 %vm62_vm3, %v4491_v62  ;;  %3558 = vmatprep.mubr.msk.f32.mxu1 %vm62_vm3, %v4491_v62 }
  0x6e   :  { %3642 = vmatprep.mubr.msk.f32.mxu0 %vm62_vm3, %v4503_v0 }
  0x70   :  { %3559 = vmatmul.mubr.msk.f32.gmra.mrb[12].mxu1 %vm62_vm3, %v4503_v0 }
  0x71   :  { %3643 = vmatmul.mubr.msk.f32.gmra.mrb[12].mxu0 %vm62_vm3, %v4519_v2  ;;  %3561 = vmatprep.mubr.msk.f32.mxu1 %vm62_vm3, %v4519_v2 }
  0x72   :  { %3645 = vmatprep.mubr.msk.f32.mxu0 %vm62_vm3, %v3106_v15 }
  0x74   :  { %3562 = vmatmul.mubr.msk.f32.gmra.mrb[14].mxu1 %vm62_vm3, %v3106_v15 }
  0x75   :  { %3646 = vmatmul.mubr.msk.f32.gmra.mrb[14].mxu0 %vm62_vm3, %v3107_v19 }
  0x76   :  { %3652 = vmatprep.mubr.msk.f32.mxu0 %vm62_vm3, %v4179_v14  ;;  %v3142_v14 = vld [vmem:[%s5035_s0 + $0x131] sm:$0xff] }
  0x79   :  { %3653 = vmatmul.mubr.msk.f32.vlgmr.msra.gmra.mrb[0].mxu0 %vm62_vm3, %v4196_v16  ;;  %v3169_v16 = vld [vmem:[%s5035_s0 + $0x92] sm:$0xff] }
  0x7a   :  { %3829 = vmatpush3.bf16.msk.msra.mxu0 %vm4132_vm2, %v3824_v24  ;;  %3655 = vmatprep.mubr.msk.f32.mxu0 %vm62_vm3, %v4216_v20  ;;  %v3177_v20 = vld [vmem:[%s5035_s0 + $0x132] sm:$0xff] }
  0x7d   :  { %3656 = vmatmul.mubr.msk.f32.gmra.mrb[2].mxu0 %vm62_vm3, %v4240_v25  ;;  %v2076_v25 = vld [vmem:[%s5037_s2 + $0x8] sm:$0xff] }
  0x7e   :  { %3658 = vmatprep.mubr.msk.f32.mxu0 %vm62_vm3, %v4252_v28  ;;  %v3830_v27 = vpack.c.bf16 %v2076_v25, %v2075_v22  ;;  %v2078_v28 = vld [vmem:[%s5037_s2 + $0x18] sm:$0xff] }
  0x7f   :  { %v3834_v29 = vpack.c.bf16 %v2078_v28, %v2077_v26  ;;  %v3197_v26 = vld [vmem:[%s5038_s3] ss:$0 sm:$0xff] }
  0x80   :  { %3831 = vmatprep.subr.bf16.mxu1 %v3830_v27 }
  0x81   :  { %3659 = vmatmul.mubr.msk.f32.gmra.mrb[4].mxu0 %vm62_vm3, %v4270_v30  ;;  %v2079_v30 = vld [vmem:[%s5037_s2 + $0x20] sm:$0xff]  ;;  %3833 = vmatpush3.bf16.msra.mxu1 %v3830_v27  ;;  %s4082_s2 = smov 96  }
  0x82   :  { %3661 = vmatprep.mubr.msk.f32.mxu0 %vm62_vm3, %v4367_v46  ;;  %3835 = vmatprep.subr.bf16.mxu1 %v3834_v29  ;;  %v3838_v32 = vpack.c.bf16 %v2080_v31, %v2079_v30 }
  0x85   :  { %3662 = vmatmul.mubr.msk.f32.gmra.mrb[6].mxu0 %vm62_vm3, %v3134_v4  ;;  %3837 = vmatpush3.bf16.msra.mxu1 %v3834_v29 }
  0x86   :  { %3664 = vmatprep.mubr.msk.f32.mxu0 %vm62_vm3, %v4308_v39  ;;  %3839 = vmatprep.subr.bf16.mxu1 %v3838_v32 }
  0x89   :  { %3665 = vmatmul.mubr.msk.f32.gmra.mrb[8].mxu0 %vm62_vm3, %v4320_v41  ;;  %3841 = vmatpush3.bf16.msra.mxu1 %v3838_v32 }
  0x8a   :  { %3667 = vmatprep.mubr.msk.f32.mxu0 %vm62_vm3, %v4329_v42  ;;  %3843 = vmatprep.subr.bf16.mxu1 %v3842_v35 }
  0x8d   :  { %3668 = vmatmul.mubr.msk.f32.gmra.mrb[10].mxu0 %vm62_vm3, %v4342_v43  ;;  %3845 = vmatpush3.bf16.msra.mxu1 %v3842_v35 }
  0x8e   :  { %3670 = vmatprep.mubr.msk.f32.mxu0 %vm62_vm3, %v4349_v44 }
  0x91   :  { %3671 = vmatmul.mubr.msk.f32.gmra.mrb[12].mxu0 %vm62_vm3, %v4360_v45 }
  0x92   :  { %3673 = vmatprep.mubr.msk.f32.mxu0 %vm62_vm3, %v4410_v48 }
  0x95   :  { %3674 = vmatmul.mubr.msk.f32.gmra.mrb[14].mxu0 %vm62_vm3, %v3142_v14 }
  0x96   :  { %3680 = vmatprep.mubr.msk.f32.mxu0 %vm62_vm3, %v4438_v54 }
  0x99   :  { %3681 = vmatmul.mubr.msk.f32.vlgmr.msra.gmra.mrb[0].mxu0 %vm62_vm3, %v4448_v56 }
  0x9a   :  { %3683 = vmatprep.mubr.msk.f32.mxu0 %vm62_vm3, %v4468_v59 }
  0x9d   :  { %3684 = vmatmul.mubr.msk.f32.gmra.mrb[2].mxu0 %vm62_vm3, %v4478_v61 }
  0x9e   :  { %3686 = vmatprep.mubr.msk.f32.mxu0 %vm62_vm3, %v4498_v63 }
  0xa1   :  { %3687 = vmatmul.mubr.msk.f32.gmra.mrb[4].mxu0 %vm62_vm3, %v4508_v1 }
  0xa2   :  { %3689 = vmatprep.mubr.msk.f32.mxu0 %vm62_vm3, %v4526_v3 }
  0xa5   :  { %3690 = vmatmul.mubr.msk.f32.gmra.mrb[6].mxu0 %vm62_vm3, %v3169_v16 }
  0xa6   :  { %3692 = vmatprep.mubr.msk.f32.mxu0 %vm62_vm3, %v4543_v8  ;;  %v2302_v8 = vld [vmem:[%s5039_s4 + $0x10] sm:$0xff] }
  0xa9   :  { %3693 = vmatmul.mubr.msk.f32.gmra.mrb[8].mxu0 %vm62_vm3, %v4548_v9 }
  0xaa   :  { %3695 = vmatprep.mubr.msk.f32.mxu0 %vm62_vm3, %v4560_v10  ;;  %v3846_v10 = vpack.c.bf16 %v2301_v6, %v2300_v5 }
  0xac   :  { %3847 = vmatprep.subr.bf16.mxu1 %v3846_v10 }
  0xad   :  { %3696 = vmatmul.mubr.msk.f32.gmra.mrb[10].mxu0 %vm62_vm3, %v4568_v11  ;;  %v2303_v11 = vld [vmem:[%s5039_s4 + $0x18] sm:$0xff] }
  0xae   :  { %3698 = vmatprep.mubr.msk.f32.mxu0 %vm62_vm3, %v4581_v7 }
  0xb1   :  { %3699 = vmatmul.mubr.msk.f32.gmra.mrb[12].mxu0 %vm62_vm3, %v4586_v12 }
  0xb2   :  { %3701 = vmatprep.mubr.msk.f32.mxu0 %vm62_vm3, %v4599_v17  ;;  %v3850_v17 = vpack.c.bf16 %v2303_v11, %v2302_v8 }
  0xb5   :  { %3702 = vmatmul.mubr.msk.f32.gmra.mrb[14].mxu0 %vm62_vm3, %v3177_v20 }
 0x11b   :  { %v3514_v36 = vpop.f32.mrb[0].mxu1 }
 0x11c   :  { %v592_v37 = vpop.f32.mrb[1].mxu1 }
 0x11f   :  { %v3517_v38 = vpop.f32.mrb[2].mxu1 }
 0x120   :  { %v602_v39 = vpop.f32.mrb[3].mxu1 }
 0x123   :  { %v3520_v40 = vpop.f32.mrb[4].mxu1 }
 0x124   :  { %v612_v41 = vpop.f32.mrb[5].mxu1 }
 0x127   :  { %v3523_v42 = vpop.f32.mrb[6].mxu1 }
 0x128   :  { %v622_v43 = vpop.f32.mrb[7].mxu1 }
 0x13b   :  { %v3554_v44 = vpop.f32.mrb[8].mxu1 }
 0x13c   :  { %v864_v45 = vpop.f32.mrb[9].mxu1 }
 0x13f   :  { %v3557_v46 = vpop.f32.mrb[10].mxu1 }
 0x140   :  { %v874_v47 = vpop.f32.mrb[11].mxu1 }
 0x143   :  { %v4783_v48 = vpop.f32.mrb[12].mxu1 }
 0x144   :  { %v4785_v49 = vpop.f32.mrb[13].mxu1 }
 0x147   :  { %v4787_v50 = vpop.f32.mrb[14].mxu1 }
 0x148   :  { %v4789_v51 = vpop.f32.mrb[15].mxu1 }
 0x16c   :  { %v3682_v52 = vpop.f32.mrb[0].mxu0 }
 0x16d   :  { %v4791_v53 = vadd.f32 %v3682_v52, %v3514_v36  ;;  %v1980_v54 = vpop.f32.mrb[1].mxu0 }
 0x16e   :  { %v4793_v55 = vadd.f32 %v1980_v54, %v592_v37 }
 0x16f   :  { %2598 = vrot.lane.b32.xlu1 %v4791_v53, %s4082_s2 }
 0x170   :  { %v3685_v56 = vpop.f32.mrb[2].mxu0  ;;  %2596 = vrot.lane.b32.xlu0 %v4793_v55, %s4082_s2  ;;  %3720 = vmatprep.mubr.msk.f32.mxu1 %vm2090_vm4, %v4793_v55 }
 0x171   :  { %v4801_v57 = vadd.f32 %v3685_v56, %v3517_v38  ;;  %v1990_v58 = vpop.f32.mrb[3].mxu0  ;;  %3721 = vmatmul.mubr.msk.f32.vlgmr.msra.gmra.mrb[16].mxu1 %vm2090_vm4, %v4791_v53 }
 0x172   :  { %v4805_v59 = vadd.f32 %v1990_v58, %v602_v39  ;;  %3849 = vmatpush3.bf16.msra.mxu1 %v3846_v10 }
 0x173   :  { %2602 = vrot.lane.b32.xlu1 %v4801_v57, %s4082_s2  ;;  %3851 = vmatprep.subr.bf16.mxu1 %v3850_v17 }
 0x174   :  { %v3688_v60 = vpop.f32.mrb[4].mxu0  ;;  %2600 = vrot.lane.b32.xlu0 %v4805_v59, %s4082_s2  ;;  %3723 = vmatprep.mubr.msk.f32.mxu1 %vm2090_vm4, %v4805_v59 }
 0x175   :  { %v4813_v61 = vadd.f32 %v3688_v60, %v3520_v40  ;;  %v2000_v62 = vpop.f32.mrb[5].mxu0  ;;  %3724 = vmatmul.mubr.msk.f32.gmra.mrb[18].mxu1 %vm2090_vm4, %v4801_v57 }
 0x176   :  { %v4817_v63 = vadd.f32 %v2000_v62, %v612_v41  ;;  %3853 = vmatpush3.bf16.msra.mxu1 %v3850_v17 }
 0x177   :  { %2606 = vrot.lane.b32.xlu1 %v4813_v61, %s4082_s2 }
 0x178   :  { %v3691_v0 = vpop.f32.mrb[6].mxu0  ;;  %2604 = vrot.lane.b32.xlu0 %v4817_v63, %s4082_s2  ;;  %3726 = vmatprep.mubr.msk.f32.mxu1 %vm2090_vm4, %v4817_v63 }
 0x179   :  { %v4825_v1 = vadd.f32 %v3691_v0, %v3523_v42  ;;  %v2010_v2 = vpop.f32.mrb[7].mxu0  ;;  %3727 = vmatmul.mubr.msk.f32.gmra.mrb[20].mxu1 %vm2090_vm4, %v4813_v61 }
 0x17a   :  { %v4829_v3 = vadd.f32 %v2010_v2, %v622_v43 }
 0x17b   :  { %2610 = vrot.lane.b32.xlu1 %v4825_v1, %s4082_s2 }
 0x17c   :  { %v3694_v9 = vpop.f32.mrb[8].mxu0  ;;  %2608 = vrot.lane.b32.xlu0 %v4829_v3, %s4082_s2  ;;  %3729 = vmatprep.mubr.msk.f32.mxu1 %vm2090_vm4, %v4829_v3 }
 0x17d   :  { %v4849_v7 = vadd.f32 %v3694_v9, %v3554_v44  ;;  %v2020_v12 = vpop.f32.mrb[9].mxu0  ;;  %3730 = vmatmul.mubr.msk.f32.gmra.mrb[22].mxu1 %vm2090_vm4, %v4825_v1 }
 0x17e   :  { %v4853_v18 = vadd.f32 %v2020_v12, %v864_v45 }
 0x17f   :  { %2614 = vrot.lane.b32.xlu1 %v4849_v7, %s4082_s2 }
 0x180   :  { %v3697_v21 = vpop.f32.mrb[10].mxu0  ;;  %2612 = vrot.lane.b32.xlu0 %v4853_v18, %s4082_s2  ;;  %3732 = vmatprep.mubr.msk.f32.mxu1 %vm2090_vm4, %v4853_v18 }
 0x181   :  { %v4861_v23 = vadd.f32 %v3697_v21, %v3557_v46  ;;  %v2030_v24 = vpop.f32.mrb[11].mxu0  ;;  %3733 = vmatmul.mubr.msk.f32.gmra.mrb[24].mxu1 %vm2090_vm4, %v4849_v7 }
 0x182   :  { %v4865_v13 = vadd.f32 %v2030_v24, %v874_v47 }
 0x183   :  { %2618 = vrot.lane.b32.xlu1 %v4861_v23, %s4082_s2 }
 0x184   :  { %v3700_v15 = vpop.f32.mrb[12].mxu0  ;;  %2616 = vrot.lane.b32.xlu0 %v4865_v13, %s4082_s2  ;;  %3735 = vmatprep.mubr.msk.f32.mxu1 %vm2090_vm4, %v4865_v13 }
 0x185   :  { %v4874_v19 = vadd.f32 %v3700_v15, %v4783_v48  ;;  %v2040_v4 = vpop.f32.mrb[13].mxu0  ;;  %3736 = vmatmul.mubr.msk.f32.gmra.mrb[26].mxu1 %vm2090_vm4, %v4861_v23 }
 0x186   :  { %v4879_v14 = vadd.f32 %v2040_v4, %v4785_v49 }
 0x188   :  { %v3703_v16 = vpop.f32.mrb[14].mxu0  ;;  %2620 = vrot.lane.b32.xlu0 %v4879_v14, %s4082_s2  ;;  %3738 = vmatprep.mubr.msk.f32.mxu1 %vm2090_vm4, %v4879_v14 }
 0x189   :  { %v4886_v20 = vadd.f32 %v3703_v16, %v4787_v50  ;;  %v2050_v22 = vpop.f32.mrb[15].mxu0  ;;  %3739 = vmatmul.mubr.msk.f32.gmra.mrb[28].mxu1 %vm2090_vm4, %v4874_v19 }
 0x18a   :  { %v4891_v25 = vadd.f32 %v2050_v22, %v4789_v51 }
 0x18c   :  { %3741 = vmatprep.mubr.msk.f32.mxu1 %vm2090_vm4, %v4891_v25 }
 0x18d   :  { %3742 = vmatmul.mubr.msk.f32.gmra.mrb[30].mxu1 %vm2090_vm4, %v4886_v20 }
 0x244   :  { %v3722_v27 = vpop.f32.mrb[16].mxu1 }
 0x245   :  { %v2211_v28 = vadd.f32 %v3722_v27, %v3197_v26  ;;  %v2205_v29 = vpop.f32.mrb[17].mxu1 }
 0x246   :  { %v2206_v30 = vadd.f32 %v3197_v26, %v2205_v29  ;;  %v4919_v29 = vstv %s5040_s5  ;;  %s4084_s5 = smov 32  }
 0x247   :  { %v2285_v33 = vmax.f32 %v2211_v28, 0.0  ;;  %v4083_v28 = vmov 0  }
 0x248   :  { %v2284_v31 = vmax.f32 %v2206_v30, 0.0  ;;  %v3725_v32 = vpop.f32.mrb[18].mxu1  ;;  %3991 = vset.pattern.permute.xlu0 %v4083_v28  ;;  %3992 = vset.pattern.permute.xlu1 %v4083_v28 }
 0x249   :  { %v2221_v34 = vadd.f32 %v3725_v32, %v3197_v26  ;;  %v2215_v35 = vpop.f32.mrb[19].mxu1 }
 0x24a   :  { %v2216_v36 = vadd.f32 %v3197_v26, %v2215_v35  ;;  %3752 = vmatprep.mubr.msk.f32.mxu1 %vm2306_vm5, %v2284_v31 }
 0x24b   :  { %3753 = vmatmul.mubr.msk.f32.vlgmr.msra.gmra.mrb[32].mxu1 %vm2306_vm5, %v2285_v33  ;;  %v2287_v39 = vmax.f32 %v2221_v34, 0.0 }
 0x24c   :  { %v2286_v37 = vmax.f32 %v2216_v36, 0.0  ;;  %v3728_v38 = vpop.f32.mrb[20].mxu1 }
 0x24d   :  { %v2231_v40 = vadd.f32 %v3728_v38, %v3197_v26  ;;  %v2225_v41 = vpop.f32.mrb[21].mxu1 }
 0x24e   :  { %v2226_v42 = vadd.f32 %v3197_v26, %v2225_v41  ;;  %3755 = vmatprep.mubr.msk.f32.mxu1 %vm2306_vm5, %v2286_v37 }
 0x24f   :  { %3756 = vmatmul.mubr.msk.f32.gmra.mrb[34].mxu1 %vm2306_vm5, %v2287_v39  ;;  %v2289_v45 = vmax.f32 %v2231_v40, 0.0 }
 0x250   :  { %v2288_v43 = vmax.f32 %v2226_v42, 0.0  ;;  %v3731_v44 = vpop.f32.mrb[22].mxu1 }
 0x251   :  { %v2241_v46 = vadd.f32 %v3731_v44, %v3197_v26  ;;  %v2235_v47 = vpop.f32.mrb[23].mxu1 }
 0x252   :  { %v2236_v48 = vadd.f32 %v3197_v26, %v2235_v47  ;;  %3758 = vmatprep.mubr.msk.f32.mxu1 %vm2306_vm5, %v2288_v43 }
 0x253   :  { %3759 = vmatmul.mubr.msk.f32.gmra.mrb[36].mxu1 %vm2306_vm5, %v2289_v45  ;;  %v2291_v51 = vmax.f32 %v2241_v46, 0.0 }
 0x254   :  { %v2290_v49 = vmax.f32 %v2236_v48, 0.0  ;;  %v3734_v50 = vpop.f32.mrb[24].mxu1 }
 0x255   :  { %v2251_v52 = vadd.f32 %v3734_v50, %v3197_v26  ;;  %v2245_v54 = vpop.f32.mrb[25].mxu1 }
 0x256   :  { %v2246_v56 = vadd.f32 %v3197_v26, %v2245_v54  ;;  %3761 = vmatprep.mubr.msk.f32.mxu1 %vm2306_vm5, %v2290_v49 }
 0x257   :  { %3762 = vmatmul.mubr.msk.f32.gmra.mrb[38].mxu1 %vm2306_vm5, %v2291_v51  ;;  %v2293_v62 = vmax.f32 %v2251_v52, 0.0 }
 0x258   :  { %v2292_v58 = vmax.f32 %v2246_v56, 0.0  ;;  %v3737_v60 = vpop.f32.mrb[26].mxu1 }
 0x259   :  { %v2261_v0 = vadd.f32 %v3737_v60, %v3197_v26  ;;  %v2255_v2 = vpop.f32.mrb[27].mxu1 }
 0x25a   :  { %v2256_v5 = vadd.f32 %v3197_v26, %v2255_v2  ;;  %3764 = vmatprep.mubr.msk.f32.mxu1 %vm2306_vm5, %v2292_v58 }
 0x25b   :  { %3765 = vmatmul.mubr.msk.f32.gmra.mrb[40].mxu1 %vm2306_vm5, %v2293_v62  ;;  %v2295_v9 = vmax.f32 %v2261_v0, 0.0 }
 0x25c   :  { %v2294_v6 = vmax.f32 %v2256_v5, 0.0  ;;  %v3740_v8 = vpop.f32.mrb[28].mxu1 }
 0x25d   :  { %v2271_v10 = vadd.f32 %v3740_v8, %v3197_v26  ;;  %v2265_v11 = vpop.f32.mrb[29].mxu1 }
 0x25e   :  { %v2266_v12 = vadd.f32 %v3197_v26, %v2265_v11  ;;  %3767 = vmatprep.mubr.msk.f32.mxu1 %vm2306_vm5, %v2294_v6 }
 0x25f   :  { %3768 = vmatmul.mubr.msk.f32.gmra.mrb[42].mxu1 %vm2306_vm5, %v2295_v9  ;;  %v2297_v24 = vmax.f32 %v2271_v10, 0.0 }
 0x260   :  { %v2296_v17 = vmax.f32 %v2266_v12, 0.0  ;;  %v3743_v21 = vpop.f32.mrb[30].mxu1 }
 0x261   :  { %v2281_v15 = vadd.f32 %v3743_v21, %v3197_v26  ;;  %v2275_v4 = vpop.f32.mrb[31].mxu1 }
 0x262   :  { %v2276_v16 = vadd.f32 %v3197_v26, %v2275_v4  ;;  %3770 = vmatprep.mubr.msk.f32.mxu1 %vm2306_vm5, %v2296_v17 }
 0x263   :  { %3771 = vmatmul.mubr.msk.f32.gmra.mrb[44].mxu1 %vm2306_vm5, %v2297_v24  ;;  %v2299_v27 = vmax.f32 %v2281_v15, 0.0 }
 0x264   :  { %v2298_v22 = vmax.f32 %v2276_v16, 0.0 }
 0x266   :  { %3773 = vmatprep.mubr.msk.f32.mxu1 %vm2306_vm5, %v2298_v22 }
 0x267   :  { %3774 = vmatmul.mubr.msk.f32.gmra.mrb[46].mxu1 %vm2306_vm5, %v2299_v27 }
 0x31e   :  { %v3754_v30 = vpop.f32.mrb[32].mxu1 }
 0x31f   :  { %v2427_v26 = vadd.f32 %v3754_v30, %v4919_v29  ;;  %v2421_v31 = vpop.f32.mrb[33].mxu1 }
 0x320   :  { %v2422_v32 = vadd.f32 %v2421_v31, %v4919_v29 }
 0x321   :  { %v3231_v33 = vmul.f32 -1.442695, %v2427_v26 }
 0x322   :  { %v3230_v34 = vmul.f32 -1.442695, %v2422_v32  ;;  %v3757_v35 = vpop.f32.mrb[34].mxu1 }
 0x323   :  { %3993 = vpow2.f32 %v3231_v33  ;;  %v2437_v36 = vadd.f32 %v3757_v35, %v4919_v29  ;;  %v2431_v37 = vpop.f32.mrb[35].mxu1 }
 0x324   :  { %3995 = vpow2.f32 %v3230_v34  ;;  %v2432_v38 = vadd.f32 %v2431_v37, %v4919_v29 }
 0x325   :  { %v3233_v39 = vmul.f32 -1.442695, %v2437_v36 }
 0x326   :  { %v3232_v40 = vmul.f32 -1.442695, %v2432_v38  ;;  %v3760_v41 = vpop.f32.mrb[36].mxu1 }
 0x327   :  { %3997 = vpow2.f32 %v3233_v39  ;;  %v2447_v42 = vadd.f32 %v3760_v41, %v4919_v29  ;;  %v2441_v43 = vpop.f32.mrb[37].mxu1 }
 0x328   :  { %3999 = vpow2.f32 %v3232_v40  ;;  %v2442_v44 = vadd.f32 %v2441_v43, %v4919_v29 }
 0x329   :  { %v3235_v45 = vmul.f32 -1.442695, %v2447_v42 }
 0x32a   :  { %v3234_v46 = vmul.f32 -1.442695, %v2442_v44  ;;  %v3763_v47 = vpop.f32.mrb[38].mxu1 }
 0x32b   :  { %4001 = vpow2.f32 %v3235_v45  ;;  %v2457_v48 = vadd.f32 %v3763_v47, %v4919_v29  ;;  %v2451_v49 = vpop.f32.mrb[39].mxu1 }
 0x32c   :  { %4003 = vpow2.f32 %v3234_v46  ;;  %v2452_v50 = vadd.f32 %v2451_v49, %v4919_v29 }
 0x32d   :  { %v3994_v51 = vpop.eup %3993  ;;  %v3237_v52 = vmul.f32 -1.442695, %v2457_v48 }
 0x32e   :  { %v3996_v54 = vpop.eup %3995  ;;  %v2549_v56 = vadd.f32 1.0, %v3994_v51  ;;  %v3236_v58 = vmul.f32 -1.442695, %v2452_v50  ;;  %v3766_v60 = vpop.f32.mrb[40].mxu1 }
 0x32f   :  { %v2548_v62 = vadd.f32 1.0, %v3996_v54  ;;  %4005 = vpow2.f32 %v3237_v52  ;;  %v2467_v0 = vadd.f32 %v3766_v60, %v4919_v29  ;;  %v2461_v2 = vpop.f32.mrb[41].mxu1 }
 0x330   :  { %4007 = vrcp.f32 %v2549_v56  ;;  %v2462_v5 = vadd.f32 %v2461_v2, %v4919_v29 }
 0x331   :  { %v3998_v6 = vpop.eup %3997  ;;  %4009 = vrcp.f32 %v2548_v62  ;;  %v3239_v8 = vmul.f32 -1.442695, %v2467_v0 }
 0x332   :  { %v4000_v9 = vpop.eup %3999  ;;  %v2551_v10 = vadd.f32 1.0, %v3998_v6  ;;  %4011 = vpow2.f32 %v3236_v58  ;;  %v3238_v11 = vmul.f32 -1.442695, %v2462_v5  ;;  %v3769_v12 = vpop.f32.mrb[42].mxu1 }
 0x333   :  { %4013 = vpow2.f32 %v3239_v8  ;;  %v2477_v17 = vadd.f32 %v3769_v12, %v4919_v29  ;;  %v2471_v21 = vpop.f32.mrb[43].mxu1  ;;  %v2550_v24 = vadd.f32 1.0, %v4000_v9 }
 0x334   :  { %4015 = vrcp.f32 %v2551_v10  ;;  %v2472_v15 = vadd.f32 %v2471_v21, %v4919_v29 }
 0x335   :  { %v4002_v4 = vpop.eup %4001  ;;  %v3241_v16 = vmul.f32 -1.442695, %v2477_v17  ;;  %4017 = vpow2.f32 %v3238_v11 }
 0x336   :  { %v4004_v22 = vpop.eup %4003  ;;  %v3240_v27 = vmul.f32 -1.442695, %v2472_v15  ;;  %v3772_v28 = vpop.f32.mrb[44].mxu1  ;;  %v2553_v32 = vadd.f32 1.0, %v4002_v4 }
 0x337   :  { %v2552_v30 = vadd.f32 1.0, %v4004_v22  ;;  %4019 = vpow2.f32 %v3241_v16  ;;  %v2487_v26 = vadd.f32 %v3772_v28, %v4919_v29  ;;  %v2481_v31 = vpop.f32.mrb[45].mxu1 }
 0x338   :  { %4021 = vrcp.f32 %v2550_v24  ;;  %v2482_v33 = vadd.f32 %v2481_v31, %v4919_v29 }
 0x339   :  { %v4006_v34 = vpop.eup %4005  ;;  %4023 = vrcp.f32 %v2552_v30  ;;  %v3243_v35 = vmul.f32 -1.442695, %v2487_v26  ;;  %v2597_v26 = vpop.permute.xlu0 %2596 }
 0x33a   :  { %v4008_v36 = vpop.eup %4007  ;;  %4025 = vpow2.f32 %v3240_v27  ;;  %v3242_v37 = vmul.f32 -1.442695, %v2482_v33  ;;  %v3775_v38 = vpop.f32.mrb[46].mxu1  ;;  %v2555_v43 = vadd.f32 1.0, %v4006_v34 }
 0x33b   :  { %v4010_v39 = vpop.eup %4009  ;;  %4027 = vpow2.f32 %v3243_v35  ;;  %v2497_v40 = vadd.f32 %v3775_v38, %v4919_v29  ;;  %2667 = vperm.xlu0 %3991, %v4008_v36   ;;  %v2491_v41 = vpop.f32.mrb[47].mxu1 }
 0x33c   :  { %v4012_v42 = vpop.eup %4011  ;;  %4029 = vrcp.f32 %v2553_v32  ;;  %v2492_v44 = vadd.f32 %v2491_v41, %v4919_v29  ;;  %v2599_v32 = vpop.permute.xlu1 %2598 }
 0x33d   :  { %v4014_v45 = vpop.eup %4013  ;;  %v2554_v46 = vadd.f32 1.0, %v4012_v42  ;;  %4031 = vpow2.f32 %v3242_v37  ;;  %v3245_v47 = vmul.f32 -1.442695, %v2497_v40  ;;  %v2601_v31 = vpop.permute.xlu0 %2600  ;;  %v2645_v42 = vsub.f32 %v4791_v53, %v2599_v32 }
 0x33e   :  { %v4016_v48 = vpop.eup %4015  ;;  %v3244_v49 = vmul.f32 -1.442695, %v2492_v44  ;;  %v2557_v51 = vadd.f32 1.0, %v4014_v45 }
 0x33f   :  { %4033 = vrcp.f32 %v2554_v46  ;;  %2677 = vperm.xlu1 %3992, %v4016_v48   ;;  %2662 = vperm.xlu0 %3991, %v4010_v39   ;;  %v4018_v50 = vpop.eup %4017  ;;  %v2644_v46 = vsub.f32 %v4793_v55, %v2597_v26 }
 0x340   :  { %4035 = vrcp.f32 %v2555_v43  ;;  %v2556_v54 = vadd.f32 1.0, %v4018_v50  ;;  %v2603_v34 = vpop.permute.xlu1 %2602 }
 0x341   :  { %v4020_v52 = vpop.eup %4019  ;;  %4037 = vpow2.f32 %v3245_v47  ;;  %v2605_v33 = vpop.permute.xlu0 %2604  ;;  %v2647_v47 = vsub.f32 %v4801_v57, %v2603_v34 }
 0x342   :  { %v4022_v56 = vpop.eup %4021  ;;  %4039 = vpow2.f32 %v3244_v49  ;;  %v2559_v60 = vadd.f32 1.0, %v4020_v52  ;;  %v2646_v52 = vsub.f32 %v4805_v59, %v2601_v31 }
 0x343   :  { %v4024_v58 = vpop.eup %4023  ;;  %4041 = vrcp.f32 %v2556_v54  ;;  %2672 = vperm.xlu1 %3992, %v4022_v56  }
 0x344   :  { %v4026_v29 = vpop.eup %4025  ;;  %4043 = vrcp.f32 %v2557_v51  ;;  %2682 = vperm.xlu0 %3991, %v4024_v58   ;;  %v2607_v36 = vpop.permute.xlu1 %2606 }
 0x345   :  { %v4028_v62 = vpop.eup %4027  ;;  %v2558_v0 = vadd.f32 1.0, %v4026_v29  ;;  %v2609_v35 = vpop.permute.xlu0 %2608  ;;  %v2649_v29 = vsub.f32 %v4813_v61, %v2607_v36 }
 0x346   :  { %v4030_v2 = vpop.eup %4029  ;;  %v2561_v6 = vadd.f32 1.0, %v4028_v62 }
 0x347   :  { %v4032_v5 = vpop.eup %4031  ;;  %4045 = vrcp.f32 %v2558_v0  ;;  %2687 = vperm.xlu1 %3992, %v4030_v2  }
 0x348   :  { %4047 = vrcp.f32 %v2559_v60  ;;  %v2560_v8 = vadd.f32 1.0, %v4032_v5  ;;  %v2611_v38 = vpop.permute.xlu1 %2610  ;;  %v2648_v60 = vsub.f32 %v4817_v63, %v2605_v33 }
 0x349   :  { %v4034_v9 = vpop.eup %4033  ;;  %v2613_v37 = vpop.permute.xlu0 %2612  ;;  %v2651_v5 = vsub.f32 %v4825_v1, %v2611_v38 }
 0x34a   :  { %v4036_v10 = vpop.eup %4035  ;;  %4049 = vrcp.f32 %v2560_v8  ;;  %2692 = vperm.xlu0 %3991, %v4034_v9  }
 0x34b   :  { %v4038_v11 = vpop.eup %4037  ;;  %2697 = vperm.xlu1 %3992, %v4036_v10   ;;  %4051 = vrcp.f32 %v2561_v6  ;;  %v2650_v6 = vsub.f32 %v4829_v3, %v2609_v35 }
 0x34c   :  { %v4040_v12 = vpop.eup %4039  ;;  %v2563_v17 = vadd.f32 1.0, %v4038_v11  ;;  %v2615_v40 = vpop.permute.xlu1 %2614 }
 0x34d   :  { %v4042_v21 = vpop.eup %4041  ;;  %v2562_v24 = vadd.f32 1.0, %v4040_v12  ;;  %v2617_v39 = vpop.permute.xlu0 %2616  ;;  %v2653_v12 = vsub.f32 %v4849_v7, %v2615_v40 }
 0x34e   :  { %v4044_v15 = vpop.eup %4043  ;;  %2702 = vperm.xlu0 %3991, %v4042_v21  }
 0x34f   :  { %4053 = vrcp.f32 %v2562_v24  ;;  %2707 = vperm.xlu1 %3992, %v4044_v15  }
 0x350   :  { %4055 = vrcp.f32 %v2563_v17  ;;  %v2619_v43 = vpop.permute.xlu1 %2618  ;;  %v2652_v17 = vsub.f32 %v4853_v18, %v2613_v37 }
 0x351   :  { %v4046_v4 = vpop.eup %4045  ;;  %v2621_v41 = vpop.permute.xlu0 %2620 }
 0x352   :  { %v4048_v16 = vpop.eup %4047  ;;  %2712 = vperm.xlu0 %3991, %v4046_v4   ;;  %v2656_v31 = vsub.f32 %v4879_v14, %v2621_v41 }
 0x353   :  { %2717 = vperm.xlu1 %3992, %v4048_v16   ;;  %v2655_v16 = vsub.f32 %v4861_v23, %v2619_v43 }
 0x354   :  { %v4050_v22 = vpop.eup %4049 }
 0x355   :  { %v4052_v27 = vpop.eup %4051 }
 0x356   :  { %2722 = vperm.xlu0 %3991, %v4050_v22   ;;  %v2654_v22 = vsub.f32 %v4865_v13, %v2617_v39 }
 0x357   :  { %2727 = vperm.xlu1 %3992, %v4052_v27  }
 0x359   :  { %v4054_v28 = vpop.eup %4053 }
 0x35a   :  { %v4056_v30 = vpop.eup %4055  ;;  %2732 = vperm.xlu0 %3991, %v4054_v28  }
 0x35b   :  { %2737 = vperm.xlu1 %3992, %v4056_v30  }
 0x35e   :  { %2624 = vrot.lane.b32.xlu0 %v4891_v25, %s4082_s2 }
 0x35f   :  { %2622 = vrot.lane.b32.xlu1 %v4874_v19, %s4082_s2 }
 0x363   :  { %2626 = vrot.lane.b32.xlu1 %v4886_v20, %s4082_s2 }
 0x3ba   :  { %v2668_v44 = vpop.permute.xlu0 %2667 }
 0x3bb   :  { %v2741_v45 = vmul.f32 %v2668_v44, %v2645_v42 }
 0x3bd   :  { %2774 = vrot.lane.b32.xlu1 %v2741_v45, %s4084_s5 }
 0x3be   :  { %v2678_v48 = vpop.permute.xlu1 %2677  ;;  %v2663_v49 = vpop.permute.xlu0 %2662 }
 0x3bf   :  { %v2743_v50 = vmul.f32 %v2678_v48, %v2647_v47  ;;  %v2740_v51 = vmul.f32 %v2663_v49, %v2644_v46 }
 0x3c1   :  { %2778 = vrot.lane.b32.xlu1 %v2743_v50, %s4084_s5  ;;  %2772 = vrot.lane.b32.xlu0 %v2740_v51, %s4084_s5 }
 0x3c2   :  { %v2673_v54 = vpop.permute.xlu1 %2672 }
 0x3c3   :  { %v2742_v56 = vmul.f32 %v2673_v54, %v2646_v52  ;;  %v2683_v58 = vpop.permute.xlu0 %2682 }
 0x3c4   :  { %v2744_v0 = vmul.f32 %v2683_v58, %v2648_v60 }
 0x3c5   :  { %2776 = vrot.lane.b32.xlu0 %v2742_v56, %s4084_s5 }
 0x3c6   :  { %v2688_v62 = vpop.permute.xlu1 %2687 }
 0x3c7   :  { %v2745_v2 = vmul.f32 %v2688_v62, %v2649_v29 }
 0x3c9   :  { %v2693_v8 = vpop.permute.xlu0 %2692  ;;  %2782 = vrot.lane.b32.xlu1 %v2745_v2, %s4084_s5  ;;  %2780 = vrot.lane.b32.xlu0 %v2744_v0, %s4084_s5 }
 0x3ca   :  { %v2698_v9 = vpop.permute.xlu1 %2697  ;;  %v2746_v10 = vmul.f32 %v2693_v8, %v2650_v6 }
 0x3cb   :  { %v2747_v11 = vmul.f32 %v2698_v9, %v2651_v5 }
 0x3cd   :  { %v2703_v21 = vpop.permute.xlu0 %2702  ;;  %2786 = vrot.lane.b32.xlu1 %v2747_v11, %s4084_s5  ;;  %2784 = vrot.lane.b32.xlu0 %v2746_v10, %s4084_s5 }
 0x3ce   :  { %v2708_v24 = vpop.permute.xlu1 %2707  ;;  %v2748_v15 = vmul.f32 %v2703_v21, %v2652_v17 }
 0x3cf   :  { %v2749_v4 = vmul.f32 %v2708_v24, %v2653_v12 }
 0x3d1   :  { %v2713_v27 = vpop.permute.xlu0 %2712  ;;  %2790 = vrot.lane.b32.xlu1 %v2749_v4, %s4084_s5  ;;  %2788 = vrot.lane.b32.xlu0 %v2748_v15, %s4084_s5 }
 0x3d2   :  { %v2718_v28 = vpop.permute.xlu1 %2717  ;;  %v2750_v30 = vmul.f32 %v2713_v27, %v2654_v22 }
 0x3d3   :  { %v2751_v26 = vmul.f32 %v2718_v28, %v2655_v16 }
 0x3d5   :  { %v2723_v32 = vpop.permute.xlu0 %2722  ;;  %2794 = vrot.lane.b32.xlu1 %v2751_v26, %s4084_s5  ;;  %2792 = vrot.lane.b32.xlu0 %v2750_v30, %s4084_s5 }
 0x3d6   :  { %v2728_v33 = vpop.permute.xlu1 %2727  ;;  %v2752_v34 = vmul.f32 %v2723_v32, %v2656_v31 }
 0x3d9   :  { %v2733_v35 = vpop.permute.xlu0 %2732  ;;  %2796 = vrot.lane.b32.xlu0 %v2752_v34, %s4084_s5 }
 0x3da   :  { %v2738_v36 = vpop.permute.xlu1 %2737 }
 0x3dd   :  { %v2625_v37 = vpop.permute.xlu0 %2624 }
 0x3de   :  { %v2658_v38 = vsub.f32 %v4891_v25, %v2625_v37  ;;  %v2623_v39 = vpop.permute.xlu1 %2622 }
 0x3df   :  { %v2657_v40 = vsub.f32 %v4874_v19, %v2623_v39 }
 0x3e0   :  { %v2754_v42 = vmul.f32 %v2733_v35, %v2658_v38 }
 0x3e1   :  { %v2753_v43 = vmul.f32 %v2728_v33, %v2657_v40 }
 0x3e2   :  { %2800 = vrot.lane.b32.xlu0 %v2754_v42, %s4084_s5  ;;  %v2627_v41 = vpop.permute.xlu1 %2626 }
 0x3e3   :  { %v2659_v44 = vsub.f32 %v4886_v20, %v2627_v41  ;;  %2798 = vrot.lane.b32.xlu1 %v2753_v43, %s4084_s5 }
 0x3e5   :  { %v2755_v45 = vmul.f32 %v2738_v36, %v2659_v44 }
 0x3e7   :  { %2802 = vrot.lane.b32.xlu1 %v2755_v45, %s4084_s5 }
 0x42f   :  { %v2775_v46 = vpop.permute.xlu1 %2774 }
 0x430   :  { %v2821_v47 = vadd.f32 %v4791_v53, %v2775_v46 }
 0x432   :  { %2854 = vrot.lane.b32.xlu1 %v2821_v47, %s4082_s2 }
 0x433   :  { %v2779_v48 = vpop.permute.xlu1 %2778  ;;  %v2773_v49 = vpop.permute.xlu0 %2772 }
 0x434   :  { %v2823_v50 = vadd.f32 %v4801_v57, %v2779_v48  ;;  %v2820_v51 = vadd.f32 %v4793_v55, %v2773_v49 }
 0x436   :  { %2858 = vrot.lane.b32.xlu1 %v2823_v50, %s4082_s2  ;;  %2852 = vrot.lane.b32.xlu0 %v2820_v51, %s4082_s2 }
 0x437   :  { %v2777_v52 = vpop.permute.xlu0 %2776 }
 0x438   :  { %v2822_v54 = vadd.f32 %v4805_v59, %v2777_v52 }
 0x43a   :  { %2856 = vrot.lane.b32.xlu0 %v2822_v54, %s4082_s2 }
 0x43b   :  { %v2783_v56 = vpop.permute.xlu1 %2782  ;;  %v2781_v58 = vpop.permute.xlu0 %2780 }
 0x43c   :  { %v2825_v53 = vadd.f32 %v4813_v61, %v2783_v56  ;;  %v2824_v29 = vadd.f32 %v4817_v63, %v2781_v58 }
 0x43e   :  { %2862 = vrot.lane.b32.xlu1 %v2825_v53, %s4082_s2  ;;  %2860 = vrot.lane.b32.xlu0 %v2824_v29, %s4082_s2 }
 0x43f   :  { %v2787_v55 = vpop.permute.xlu1 %2786  ;;  %v2785_v57 = vpop.permute.xlu0 %2784 }
 0x440   :  { %v2827_v60 = vadd.f32 %v4825_v1, %v2787_v55  ;;  %v2826_v62 = vadd.f32 %v4829_v3, %v2785_v57 }
 0x442   :  { %2866 = vrot.lane.b32.xlu1 %v2827_v60, %s4082_s2  ;;  %2864 = vrot.lane.b32.xlu0 %v2826_v62, %s4082_s2 }
 0x443   :  { %v2791_v59 = vpop.permute.xlu1 %2790  ;;  %v2789_v0 = vpop.permute.xlu0 %2788 }
 0x444   :  { %v2829_v61 = vadd.f32 %v4849_v7, %v2791_v59  ;;  %v2828_v63 = vadd.f32 %v4853_v18, %v2789_v0 }
 0x446   :  { %2870 = vrot.lane.b32.xlu1 %v2829_v61, %s4082_s2  ;;  %2868 = vrot.lane.b32.xlu0 %v2828_v63, %s4082_s2 }
 0x447   :  { %v2795_v2 = vpop.permute.xlu1 %2794  ;;  %v2793_v5 = vpop.permute.xlu0 %2792 }
 0x448   :  { %v2831_v1 = vadd.f32 %v4861_v23, %v2795_v2  ;;  %v2830_v3 = vadd.f32 %v4865_v13, %v2793_v5 }
 0x44a   :  { %2874 = vrot.lane.b32.xlu1 %v2831_v1, %s4082_s2  ;;  %2872 = vrot.lane.b32.xlu0 %v2830_v3, %s4082_s2 }
 0x44b   :  { %v2797_v6 = vpop.permute.xlu0 %2796 }
 0x44c   :  { %v2832_v8 = vadd.f32 %v4879_v14, %v2797_v6 }
 0x44e   :  { %2876 = vrot.lane.b32.xlu0 %v2832_v8, %s4082_s2 }
 0x454   :  { %v2801_v7 = vpop.permute.xlu0 %2800 }
 0x455   :  { %v2834_v18 = vadd.f32 %v4891_v25, %v2801_v7  ;;  %v2799_v9 = vpop.permute.xlu1 %2798 }
 0x456   :  { %v2833_v10 = vadd.f32 %v4874_v19, %v2799_v9 }
 0x457   :  { %2880 = vrot.lane.b32.xlu0 %v2834_v18, %s4082_s2 }
 0x458   :  { %2878 = vrot.lane.b32.xlu1 %v2833_v10, %s4082_s2 }
 0x459   :  { %v2803_v23 = vpop.permute.xlu1 %2802 }
 0x45a   :  { %v2835_v13 = vadd.f32 %v4886_v20, %v2803_v23 }
 0x45c   :  { %2882 = vrot.lane.b32.xlu1 %v2835_v13, %s4082_s2 }
 0x4a4   :  { %v2855_v11 = vpop.permute.xlu1 %2854 }
 0x4a5   :  { %2901 = vst.msk [vmem:[#allocation3 + $0x8] sm:$0xff] %vm2306_vm5, %v2855_v11 }
 0x4a8   :  { %v2859_v14 = vpop.permute.xlu1 %2858  ;;  %v2853_v12 = vpop.permute.xlu0 %2852 }
 0x4a9   :  { %2903 = vst.msk [vmem:[#allocation3 + $0x18] sm:$0xff] %vm2306_vm5, %v2859_v14  ;;  %2900 = vst.msk [vmem:[#allocation3] sm:$0xff] %vm2306_vm5, %v2853_v12 }
 0x4ac   :  { %v2857_v25 = vpop.permute.xlu0 %2856 }
 0x4ad   :  { %2902 = vst.msk [vmem:[#allocation3 + $0x10] sm:$0xff] %vm2306_vm5, %v2857_v25 }
 0x4b0   :  { %v2863_v19 = vpop.permute.xlu1 %2862  ;;  %v2861_v17 = vpop.permute.xlu0 %2860 }
 0x4b1   :  { %2905 = vst.msk [vmem:[#allocation3 + $0x28] sm:$0xff] %vm2306_vm5, %v2863_v19  ;;  %2904 = vst.msk [vmem:[#allocation3 + $0x20] sm:$0xff] %vm2306_vm5, %v2861_v17 }
 0x4b4   :  { %v2867_v20 = vpop.permute.xlu1 %2866  ;;  %v2865_v21 = vpop.permute.xlu0 %2864 }
 0x4b5   :  { %2907 = vst.msk [vmem:[#allocation3 + $0x38] sm:$0xff] %vm2306_vm5, %v2867_v20  ;;  %2906 = vst.msk [vmem:[#allocation3 + $0x30] sm:$0xff] %vm2306_vm5, %v2865_v21 }
 0x4b8   :  { %v2871_v24 = vpop.permute.xlu1 %2870  ;;  %v2869_v15 = vpop.permute.xlu0 %2868 }
 0x4b9   :  { %2909 = vst.msk [vmem:[#allocation3 + $0x48] sm:$0xff] %vm2306_vm5, %v2871_v24  ;;  %2908 = vst.msk [vmem:[#allocation3 + $0x40] sm:$0xff] %vm2306_vm5, %v2869_v15 }
 0x4bc   :  { %v2875_v4 = vpop.permute.xlu1 %2874  ;;  %v2873_v16 = vpop.permute.xlu0 %2872 }
 0x4bd   :  { %2911 = vst.msk [vmem:[#allocation3 + $0x58] sm:$0xff] %vm2306_vm5, %v2875_v4  ;;  %2910 = vst.msk [vmem:[#allocation3 + $0x50] sm:$0xff] %vm2306_vm5, %v2873_v16 }
 0x4c0   :  { %v2877_v22 = vpop.permute.xlu0 %2876 }
 0x4c1   :  { %2912 = vst.msk [vmem:[#allocation3 + $0x60] sm:$0xff] %vm2306_vm5, %v2877_v22 }
 0x4c9   :  { %v2881_v27 = vpop.permute.xlu0 %2880 }
 0x4ca   :  { %2914 = vst.msk [vmem:[#allocation3 + $0x70] sm:$0xff] %vm2306_vm5, %v2881_v27  ;;  %v2879_v28 = vpop.permute.xlu1 %2878 }
 0x4cb   :  { %2913 = vst.msk [vmem:[#allocation3 + $0x68] sm:$0xff] %vm2306_vm5, %v2879_v28 }
 0x4ce   :  { %v2883_v30 = vpop.permute.xlu1 %2882 }
 0x4cf   :  { %2915 = vst.msk [vmem:[#allocation3 + $0x78] sm:$0xff] %vm2306_vm5, %v2883_v30 }
 0x4d0   :  { %4068 = shalt.err (!%p4065_p4)
}
 0x4d1   :  { %s4069_s13 = scalar_lea.hbm %s5041_s6, 2048 }
 0x4d2   :  { %p4070_p5 = scmp.ne.s32.totalorder %s5041_s6, %s4069_s13  ;;  %p4073_p6 = scmp.lt.u32.totalorder %s4069_s13, %s5041_s6 }
 0x4d4   :  { %p4075_p7 = pnand %p4073_p6, %p4070_p5 }
 0x4d6   :  { %4078 = shalt.err (!%p4075_p7)
}
 0x4d7   :  { %s4086_s17 = smov 128   ;;  %s4087_s18 = smov 8  }
 0x4d8   :  { %2927 = dma.vmem_to_hbm [thread:$0]  %s2922_s9, 2048, %s5041_s6, [#allocation4], %s4086_s17, %s4086_s17, %s4087_s18  }
 0x4d9   :  { %4079 = dma.done.wait [#allocation4], 2048  }
 0x4da   :  { %4080 = vsyncadd [#allocation4], 4294965248 }
 0x4db   :  { %2931 = vsyncpa [#allocation4], 1 }

</bundles_post_ra>
